<compile_context>
chip_gen: v7x
topology: tpu7x:2x2x1
jax: 0.10.0
libtpu: 0.0.40
codegen_flags: <defaults>
</compile_context>

<pallas_src>
import functools

import jax
import jax.numpy as jnp
from jax import lax
from jax.experimental import pallas as pl
from jax.experimental.pallas import tpu as pltpu


# ------------------------------ hardware queries ---------------------------------
@functools.lru_cache(maxsize=1)
def _vmem_capacity_bytes():
    try:
        info = pltpu.get_tpu_info()
        cap = getattr(info, "vmem_capacity_bytes", None)
        if cap:
            return int(cap)
    except Exception:
        pass
    try:
        kind = jax.devices()[0].device_kind.lower()
        if "v7" in kind:
            return 64 << 20
    except Exception:
        pass
    return 128 << 20


@functools.lru_cache(maxsize=1)
def _num_tensorcores():
    # Only used to decide whether a 2-way batch split pays (megacore / v7x).
    try:
        info = pltpu.get_tpu_info()
        for attr in ("num_tensorcores", "tensorcore_count", "num_cores",
                     "core_count", "cores_per_chip"):
            v = getattr(info, attr, None)
            if isinstance(v, int) and v >= 1:
                return v
    except Exception:
        pass
    try:
        if "v7" in jax.devices()[0].device_kind.lower():
            return 2
    except Exception:
        pass
    return 1


# ------------------------------- Pallas kernel ----------------------------------
def _slstm_chunk_kernel(gx_ref, wh_ref, out_ref,
                        h_sc, c_sc, n_sc, m_sc,
                        *, hidden_size, time_chunk, unroll, slab_width,
                        use_slice_stores):
    """One time-chunk of the sLSTM recurrence for one batch block.

    gx_ref : [TT, BB, 4H]    precomputed x @ W_x + b for this chunk
    wh_ref : [H, 4H]         recurrent weight (resident across the grid)
    out_ref: [TT, BB, slab]  fused output slab: [h | c | n] (+ m padding if 4H)
    *_sc   : [BB, H]         carried state across time chunks
    """
    H = hidden_size
    tc = pl.program_id(1)          # time-chunk index (sequential / "arbitrary")

    @pl.when(tc == 0)
    def _():
        h_sc[...] = jnp.zeros_like(h_sc)
        c_sc[...] = jnp.zeros_like(c_sc)
        n_sc[...] = jnp.zeros_like(n_sc)
        m_sc[...] = jnp.zeros_like(m_sc)

    wh = wh_ref[...]               # hoisted out of the time loop

    def step(tt, carry):
        h, c, n, m = carry
        # Only the recurrent half of the projection runs per step.
        gates = gx_ref[tt] + jnp.dot(h, wh, preferred_element_type=jnp.float32)

        z_til = gates[:, 0 * H:1 * H]
        i_til = gates[:, 1 * H:2 * H]
        f_til = gates[:, 2 * H:3 * H]
        o_til = gates[:, 3 * H:4 * H]

        z_t = jnp.tanh(z_til)
        o_t = jax.nn.sigmoid(o_til)
        # EUP-lean gate math: one log_sigmoid, recover f_t via exp (no separate
        # sigmoid on f_til); log(exp(i_tilda)) == i_tilda so that pair is gone.
        log_f = jax.nn.log_sigmoid(f_til)
        f_t = jnp.exp(log_f)
        m_t = jnp.maximum(log_f + m, i_til)
        i_prime = jnp.exp(i_til - m_t)
        c_t = f_t * c + i_prime * z_t
        n_t = f_t * n + i_prime
        # Exact divide kept for tight tolerance vs the f32 reference;
        # pl.reciprocal(n_t, approx=True) is the cheaper EUP alternative.
        h_t = o_t * (c_t / n_t)

        if use_slice_stores:
            # H % 128 == 0: lane-dense slice stores, no per-step concat temp.
            out_ref[tt, :, 0 * H:1 * H] = h_t
            out_ref[tt, :, 1 * H:2 * H] = c_t
            out_ref[tt, :, 2 * H:3 * H] = n_t
            if slab_width == 4 * H:
                out_ref[tt, :, 3 * H:4 * H] = m_t
        else:
            if slab_width == 4 * H:
                # Small H: keep the 4H slab so the store stays lane-dense.
                out_ref[tt] = jnp.concatenate([h_t, c_t, n_t, m_t], axis=-1)
            else:
                out_ref[tt] = jnp.concatenate([h_t, c_t, n_t], axis=-1)
        return (h_t, c_t, n_t, m_t)

    carry0 = (h_sc[...], c_sc[...], n_sc[...], m_sc[...])
    h, c, n, m = lax.fori_loop(0, time_chunk, step, carry0, unroll=unroll)

    # Persist state for the next time chunk.
    h_sc[...] = h
    c_sc[...] = c
    n_sc[...] = n
    m_sc[...] = m


# --------------------------------- wrappers --------------------------------------
def _round_up(x, m):
    return ((x + m - 1) // m) * m


def _pick_batch_block(B_pad):
    # Split the batch only when >= 2 TensorCores can actually run the halves
    # concurrently (v7x megacore) and both halves stay sublane-aligned.
    if _num_tensorcores() >= 2 and B_pad % 16 == 0:
        return B_pad // 2
    return B_pad


def _vmem_estimate(tt, BB, H, g_in, g_out):
    gx = 2 * tt * BB * g_in * 4       # double-buffered input chunk
    out = 2 * tt * BB * g_out * 4     # double-buffered output chunk
    wh = 2 * H * g_in * 4             # resident weight (double-buffered spec)
    st = 4 * BB * H * 4               # state scratch
    return gx + out + wh + st


def _plan_time_chunk(T, BB, H, g_in, g_out, vmem_cap):
    # Generation-aware base chunk: 64 on 128 MiB parts (v5e/v6e), 32 on v7x.
    base = 64 if vmem_cap >= (100 << 20) else 32
    tt = min(base, T)
    budget = max(vmem_cap // 2, 8 << 20)
    while tt > 8 and _vmem_estimate(tt, BB, H, g_in, g_out) > budget:
        tt //= 2
    t_pad = _round_up(T, tt)          # pad T instead of shrinking TT
    return tt, t_pad


def _slstm_layer(gates_x, wh, hidden_size):
    """Run the recurrent part of one sLSTM layer over a [T, B, 4H] gate slab.

    gates_x batch dim is assumed already padded to a multiple of 8.
    Returns (h_seq, c_seq, n_seq), each [T, B, H].
    """
    T, B, G = gates_x.shape
    H = hidden_size
    assert G == 4 * H and B % 8 == 0

    vmem_cap = _vmem_capacity_bytes()
    BB = _pick_batch_block(B)

    # Output slab: drop the dead m-lane padding when 3H is lane-dense.
    slab = 3 * H if (3 * H) % 128 == 0 else 4 * H
    use_slice_stores = (H % 128 == 0)

    TT, T_pad = _plan_time_chunk(T, BB, H, G, slab, vmem_cap)
    if T_pad != T:
        gates_x = jnp.pad(gates_x, ((0, T_pad - T), (0, 0), (0, 0)))

    grid = (B // BB, T_pad // TT)
    # Short fixed loops: full unroll (LLO visibility); long loops: partial unroll.
    unroll = True if TT <= 16 else 8

    vmem_need = _vmem_estimate(TT, BB, H, G, slab)
    vmem_limit = int(min(max(2 * vmem_need + (4 << 20), 32 << 20),
                         int(vmem_cap * 0.9)))

    kernel = functools.partial(_slstm_chunk_kernel, hidden_size=H,
                               time_chunk=TT, unroll=unroll, slab_width=slab,
                               use_slice_stores=use_slice_stores)

    grid_spec = pltpu.PrefetchScalarGridSpec(
        num_scalar_prefetch=0,
        grid=grid,
        in_specs=[
            pl.BlockSpec((TT, BB, 4 * H), lambda b, t: (t, b, 0)),   # gx chunk
            pl.BlockSpec((H, 4 * H), lambda b, t: (0, 0)),           # W_h (resident)
        ],
        out_specs=pl.BlockSpec((TT, BB, slab), lambda b, t: (t, b, 0)),
        scratch_shapes=[pltpu.VMEM((BB, H), jnp.float32) for _ in range(4)],
    )

    out = pl.pallas_call(
        kernel,
        out_shape=jax.ShapeDtypeStruct((T_pad, B, slab), jnp.float32),
        grid_spec=grid_spec,
        compiler_params=pltpu.CompilerParams(
            # batch axis parallel (megacore on v7x), time axis sequential.
            # NOTE: state scratch is only valid with time as the innermost axis
            # and the reset at tc == 0 — do not reorder the grid.
            dimension_semantics=("parallel", "arbitrary"),
            vmem_limit_bytes=vmem_limit),
    )(gates_x, wh)

    # Split the fused slab back into h / c / n sequences and drop T padding.
    # TODO(synk): for H % 128 == 0, emitting three separate lane-dense outputs
    # (or verifying XLA fuses these slices) would halve output-side HBM traffic.
    return (out[:T, :, 0 * H:1 * H],
            out[:T, :, 1 * H:2 * H],
            out[:T, :, 2 * H:3 * H])


def slstm_forward(x, params, batch_first=False):
    """JAX/Pallas equivalent of sLSTM.forward with zero-initialized states.

    params: list of (W[[I_l+H, 4H]], B[[4H]]) per layer.
    Returns (H[-1], (H, C, N, M)) with the same stacking (and the same
    state-index quirk) as the PyTorch module.
    """
    if batch_first:
        x = jnp.transpose(x, (1, 0, 2))
    T, B, _ = x.shape

    # Pad batch to a multiple of 8 (full f32 sublanes); sliced off at the end.
    B_pad = _round_up(max(B, 8), 8)
    if B_pad != B:
        x = jnp.pad(x, ((0, 0), (0, B_pad - B), (0, 0)))

    Hs, Cs, Ns, Ms = [], [], [], []
    inp = x
    for W, b in params:
        I = inp.shape[-1]
        H = W.shape[1] // 4
        wx, wh = W[:I], W[I:]
        # Hoisted, non-recurrent input projection: one big [T*B, I] x [I, 4H]
        # matmul done by XLA (MXU-friendly), bias folded in here.  HIGHEST kept
        # for tight tolerance; drop to DEFAULT / bf16 for throughput if allowed.
        gx = jnp.einsum("tbi,ig->tbg", inp, wx,
                        precision=lax.Precision.HIGHEST) + b
        h_seq, c_seq, n_seq = _slstm_layer(gx, wh, H)
        Hs.append(h_seq)
        Cs.append(h_seq)   # PyTorch appends state[0] == h_t into its "C" list
        Ns.append(c_seq)   # state[1] == c_t into "N"
        Ms.append(n_seq)   # state[2] == n_t into "M"
        inp = h_seq
    H_all = jnp.stack(Hs, 0)[:, :, :B]
    C_all = jnp.stack(Cs, 0)[:, :, :B]
    N_all = jnp.stack(Ns, 0)[:, :, :B]
    M_all = jnp.stack(Ms, 0)[:, :, :B]
    return H_all[-1], (H_all, C_all, N_all, M_all)


# ----------------------------- reference (pure JAX) -----------------------------
def slstm_ref(x, params):
    T, Bsz, _ = x.shape
    Hs, Cs, Ns, Ms = [], [], [], []
    inp = x
    for W, b in params:
        H = W.shape[1] // 4
        h = c = n = m = jnp.zeros((Bsz, H), jnp.float32)
        lh, lc, ln = [], [], []
        for t in range(T):
            combined = jnp.concatenate([inp[t], h], axis=1)
            gates = jnp.einsum("bi,ig->bg", combined, W,
                               precision=lax.Precision.HIGHEST) + b
            z_til, i_til, f_til, o_til = jnp.split(gates, 4, axis=1)
            z = jnp.tanh(z_til)
            i_ = jnp.exp(i_til)
            f = jax.nn.sigmoid(f_til)
            o = jax.nn.sigmoid(o_til)
            m = jnp.maximum(jnp.log(f) + m, jnp.log(i_))
            ip = jnp.exp(i_til - m)
            c = f * c + ip * z
            n = f * n + ip
            h = o * (c / n)
            lh.append(h); lc.append(c); ln.append(n)
        hseq = jnp.stack(lh, 0)
        Hs.append(hseq); Cs.append(hseq)
        Ns.append(jnp.stack(lc, 0)); Ms.append(jnp.stack(ln, 0))
        inp = hseq
    H_all = jnp.stack(Hs, 0)
    return H_all[-1], (H_all, jnp.stack(Cs, 0), jnp.stack(Ns, 0), jnp.stack(Ms, 0))


# ----------------------------------- main ---------------------------------------
def _xavier_uniform(key, shape):
    fan_in, fan_out = shape[0], shape[1]
    bound = jnp.sqrt(6.0 / (fan_in + fan_out))
    return jax.random.uniform(key, shape, jnp.float32, -bound, bound)


if __name__ == "__main__":
    T, B, INPUT, HIDDEN, LAYERS = 8, 4, 16, 32, 2

    key = jax.random.PRNGKey(0)
    k_x, *k_w = jax.random.split(key, 1 + LAYERS)

    x = jax.random.normal(k_x, (T, B, INPUT), jnp.float32)

    params = []
    for layer in range(LAYERS):
        in_l = INPUT if layer == 0 else HIDDEN
        W = _xavier_uniform(k_w[layer], (in_l + HIDDEN, 4 * HIDDEN))
        bias = jnp.zeros((4 * HIDDEN,), jnp.float32)
        params.append((W, bias))

    out, (H_all, C_all, N_all, M_all) = slstm_forward(x, params)
    jax.block_until_ready(out)
    jax.block_until_ready(H_all)

    ref_out, (rH, rC, rN, rM) = slstm_ref(x, params)
    assert jnp.allclose(out, ref_out, atol=2e-5, rtol=1e-4)
    assert jnp.allclose(H_all, rH, atol=2e-5, rtol=1e-4)
    assert jnp.allclose(C_all, rC, atol=2e-5, rtol=1e-4)
    assert jnp.allclose(N_all, rN, atol=2e-5, rtol=1e-4)
    assert jnp.allclose(M_all, rM, atol=2e-5, rtol=1e-4)

    print("KERNEL_OK")
</pallas_src>

<mosaic_0001>
module attributes {stable_mosaic.version = 11 : i64} {
  func.func @_slstm_chunk_kernel(%arg0: i32, %arg1: i32, %arg2: memref<8x8x128xf32, #tpu.memory_space<vmem>>, %arg3: memref<32x128xf32, #tpu.memory_space<vmem>>, %arg4: memref<8x8x128xf32, #tpu.memory_space<vmem>>, %arg5: memref<8x32xf32, #tpu.memory_space<vmem>>, %arg6: memref<8x32xf32, #tpu.memory_space<vmem>>, %arg7: memref<8x32xf32, #tpu.memory_space<vmem>>, %arg8: memref<8x32xf32, #tpu.memory_space<vmem>>) attributes {dimension_semantics = [#tpu.dimension_semantics<parallel>, #tpu.dimension_semantics<arbitrary>], iteration_bounds = array<i64: 1, 1>, scalar_prefetch = 0 : i64, scratch_operands = 4 : i64, tpu.core_type = #tpu.core_type<tc>, window_params = [{transform_indices = @transform_0, window_bounds = array<i64: 8, 8, 128>}, {pipeline_mode = #tpu.pipeline_mode<synchronous>, transform_indices = @transform_1, window_bounds = array<i64: 32, 128>}, {transform_indices = @transform_2, window_bounds = array<i64: 8, 8, 128>}]} {
    %c0_i32 = arith.constant 0 : i32
    %0 = arith.cmpi eq, %arg1, %c0_i32 : i32
    %1 = arith.extui %0 : i1 to i32
    %c0_i32_0 = arith.constant 0 : i32
    %2 = arith.cmpi ne, %1, %c0_i32_0 : i32
    scf.if %2 {
      %cst_98 = arith.constant 0.000000e+00 : f32
      %412 = vector.broadcast %cst_98 : f32 to vector<8x32xf32>
      %c0_99 = arith.constant 0 : index
      %c0_100 = arith.constant 0 : index
      %413 = vector.load %arg5[%c0_99, %c0_100] : memref<8x32xf32, #tpu.memory_space<vmem>>, vector<8x32xf32>
      tpu.vector_store %arg5[%c0_99, %c0_100], %412 {strides = array<i32>} : memref<8x32xf32, #tpu.memory_space<vmem>>, vector<8x32xf32>,
      %cst_101 = arith.constant 0.000000e+00 : f32
      %414 = vector.broadcast %cst_101 : f32 to vector<8x32xf32>
      %c0_102 = arith.constant 0 : index
      %c0_103 = arith.constant 0 : index
      %415 = vector.load %arg6[%c0_102, %c0_103] : memref<8x32xf32, #tpu.memory_space<vmem>>, vector<8x32xf32>
      tpu.vector_store %arg6[%c0_102, %c0_103], %414 {strides = array<i32>} : memref<8x32xf32, #tpu.memory_space<vmem>>, vector<8x32xf32>,
      %cst_104 = arith.constant 0.000000e+00 : f32
      %416 = vector.broadcast %cst_104 : f32 to vector<8x32xf32>
      %c0_105 = arith.constant 0 : index
      %c0_106 = arith.constant 0 : index
      %417 = vector.load %arg7[%c0_105, %c0_106] : memref<8x32xf32, #tpu.memory_space<vmem>>, vector<8x32xf32>
      tpu.vector_store %arg7[%c0_105, %c0_106], %416 {strides = array<i32>} : memref<8x32xf32, #tpu.memory_space<vmem>>, vector<8x32xf32>,
      %cst_107 = arith.constant 0.000000e+00 : f32
      %418 = vector.broadcast %cst_107 : f32 to vector<8x32xf32>
      %c0_108 = arith.constant 0 : index
      %c0_109 = arith.constant 0 : index
      %419 = vector.load %arg8[%c0_108, %c0_109] : memref<8x32xf32, #tpu.memory_space<vmem>>, vector<8x32xf32>
      tpu.vector_store %arg8[%c0_108, %c0_109], %418 {strides = array<i32>} : memref<8x32xf32, #tpu.memory_space<vmem>>, vector<8x32xf32>,
    } else {
    }
    %c0 = arith.constant 0 : index
    %c0_1 = arith.constant 0 : index
    %3 = vector.load %arg3[%c0, %c0_1] : memref<32x128xf32, #tpu.memory_space<vmem>>, vector<32x128xf32>
    %c0_2 = arith.constant 0 : index
    %c0_3 = arith.constant 0 : index
    %4 = vector.load %arg5[%c0_2, %c0_3] : memref<8x32xf32, #tpu.memory_space<vmem>>, vector<8x32xf32>
    %c0_4 = arith.constant 0 : index
    %c0_5 = arith.constant 0 : index
    %5 = vector.load %arg6[%c0_4, %c0_5] : memref<8x32xf32, #tpu.memory_space<vmem>>, vector<8x32xf32>
    %c0_6 = arith.constant 0 : index
    %c0_7 = arith.constant 0 : index
    %6 = vector.load %arg7[%c0_6, %c0_7] : memref<8x32xf32, #tpu.memory_space<vmem>>, vector<8x32xf32>
    %c0_8 = arith.constant 0 : index
    %c0_9 = arith.constant 0 : index
    %7 = vector.load %arg8[%c0_8, %c0_9] : memref<8x32xf32, #tpu.memory_space<vmem>>, vector<8x32xf32>
    %c0_i32_10 = arith.constant 0 : i32
    %8 = arith.index_cast %c0_i32_10 : i32 to index
    %c0_11 = arith.constant 0 : index
    %c0_12 = arith.constant 0 : index
    %9 = vector.load %arg2[%8, %c0_11, %c0_12] : memref<8x8x128xf32, #tpu.memory_space<vmem>>, vector<1x8x128xf32>
    %10 = vector.shape_cast %9 : vector<1x8x128xf32> to vector<8x128xf32>
    %cst = arith.constant dense<0.000000e+00> : vector<8x128xf32>
    %11 = tpu.matmul %4, %3, %cst {dimension_numbers = #tpu.dot_dimension_numbers<[1], [0], [0], [1], [0, 0, 1, 1], [], []>} : vector<8x32xf32>, vector<32x128xf32>, vector<8x128xf32> -> vector<8x128xf32>
    %12 = arith.addf %10, %11 : vector<8x128xf32>
    %13 = vector.extract_strided_slice %12 {offsets = [0, 0], sizes = [8, 32], strides = [1, 1]} : vector<8x128xf32> to vector<8x32xf32>
    %14 = vector.extract_strided_slice %12 {offsets = [0, 32], sizes = [8, 32], strides = [1, 1]} : vector<8x128xf32> to vector<8x32xf32>
    %15 = vector.extract_strided_slice %12 {offsets = [0, 64], sizes = [8, 32], strides = [1, 1]} : vector<8x128xf32> to vector<8x32xf32>
    %16 = vector.extract_strided_slice %12 {offsets = [0, 96], sizes = [8, 32], strides = [1, 1]} : vector<8x128xf32> to vector<8x32xf32>
    %17 = math.tanh %13 : vector<8x32xf32>
    %18 = arith.negf %16 : vector<8x32xf32>
    %19 = math.exp %18 : vector<8x32xf32>
    %cst_13 = arith.constant 1.000000e+00 : f32
    %20 = vector.broadcast %cst_13 : f32 to vector<8x32xf32>
    %21 = arith.addf %20, %19 : vector<8x32xf32>
    %22 = arith.divf %20, %21 : vector<8x32xf32>
    %cst_14 = arith.constant 0.000000e+00 : f32
    %23 = vector.broadcast %cst_14 : f32 to vector<8x32xf32>
    %24 = arith.subf %23, %15 : vector<8x32xf32>
    %cst_15 = arith.constant 0.000000e+00 : f32
    %25 = vector.broadcast %cst_15 : f32 to vector<8x32xf32>
    %26 = arith.maximumf %24, %25 : vector<8x32xf32>
    %27 = vector.broadcast %cst_15 : f32 to vector<8x32xf32>
    %28 = arith.subf %24, %27 : vector<8x32xf32>
    %29 = arith.cmpf one, %28, %28 : vector<8x32xf32>
    %30 = vector.broadcast %cst_15 : f32 to vector<8x32xf32>
    %31 = arith.addf %24, %30 : vector<8x32xf32>
    %32 = math.absf %28 : vector<8x32xf32>
    %cst_16 = arith.constant 0.000000e+00 : f32
    %33 = vector.broadcast %cst_16 : f32 to vector<8x32xf32>
    %34 = arith.subf %33, %32 : vector<8x32xf32>
    %35 = math.exp %34 : vector<8x32xf32>
    %36 = math.log1p %35 : vector<8x32xf32>
    %37 = arith.addf %26, %36 : vector<8x32xf32>
    %38 = arith.select %29, %31, %37 : vector<8x32xi1>, vector<8x32xf32>
    %cst_17 = arith.constant 0.000000e+00 : f32
    %39 = vector.broadcast %cst_17 : f32 to vector<8x32xf32>
    %40 = arith.subf %39, %38 : vector<8x32xf32>
    %41 = math.exp %40 : vector<8x32xf32>
    %42 = arith.addf %40, %7 : vector<8x32xf32>
    %43 = arith.maximumf %42, %14 : vector<8x32xf32>
    %44 = arith.subf %14, %43 : vector<8x32xf32>
    %45 = math.exp %44 : vector<8x32xf32>
    %46 = arith.mulf %41, %5 : vector<8x32xf32>
    %47 = arith.mulf %45, %17 : vector<8x32xf32>
    %48 = arith.addf %46, %47 : vector<8x32xf32>
    %49 = arith.mulf %41, %6 : vector<8x32xf32>
    %50 = arith.addf %49, %45 : vector<8x32xf32>
    %51 = arith.divf %48, %50 : vector<8x32xf32>
    %52 = arith.mulf %22, %51 : vector<8x32xf32>
    %53 = tpu.concatenate %52, %48, %50, %43 in 1 : vector<8x32xf32>, vector<8x32xf32>, vector<8x32xf32>, vector<8x32xf32> -> vector<8x128xf32>
    %54 = arith.index_cast %c0_i32_10 : i32 to index
    %c0_18 = arith.constant 0 : index
    %c0_19 = arith.constant 0 : index
    %55 = vector.load %arg4[%54, %c0_18, %c0_19] : memref<8x8x128xf32, #tpu.memory_space<vmem>>, vector<1x8x128xf32>
    %56 = vector.shape_cast %55 : vector<1x8x128xf32> to vector<8x128xf32>
    %57 = vector.shape_cast %53 : vector<8x128xf32> to vector<1x8x128xf32>
    tpu.vector_store %arg4[%54, %c0_18, %c0_19], %57 {strides = array<i32>} : memref<8x8x128xf32, #tpu.memory_space<vmem>>, vector<1x8x128xf32>,
    %c1_i32 = arith.constant 1 : i32
    %58 = arith.index_cast %c1_i32 : i32 to index
    %c0_20 = arith.constant 0 : index
    %c0_21 = arith.constant 0 : index
    %59 = vector.load %arg2[%58, %c0_20, %c0_21] : memref<8x8x128xf32, #tpu.memory_space<vmem>>, vector<1x8x128xf32>
    %60 = vector.shape_cast %59 : vector<1x8x128xf32> to vector<8x128xf32>
    %cst_22 = arith.constant dense<0.000000e+00> : vector<8x128xf32>
    %61 = tpu.matmul %52, %3, %cst_22 {dimension_numbers = #tpu.dot_dimension_numbers<[1], [0], [0], [1], [0, 0, 1, 1], [], []>} : vector<8x32xf32>, vector<32x128xf32>, vector<8x128xf32> -> vector<8x128xf32>
    %62 = arith.addf %60, %61 : vector<8x128xf32>
    %63 = vector.extract_strided_slice %62 {offsets = [0, 0], sizes = [8, 32], strides = [1, 1]} : vector<8x128xf32> to vector<8x32xf32>
    %64 = vector.extract_strided_slice %62 {offsets = [0, 32], sizes = [8, 32], strides = [1, 1]} : vector<8x128xf32> to vector<8x32xf32>
    %65 = vector.extract_strided_slice %62 {offsets = [0, 64], sizes = [8, 32], strides = [1, 1]} : vector<8x128xf32> to vector<8x32xf32>
    %66 = vector.extract_strided_slice %62 {offsets = [0, 96], sizes = [8, 32], strides = [1, 1]} : vector<8x128xf32> to vector<8x32xf32>
    %67 = math.tanh %63 : vector<8x32xf32>
    %68 = arith.negf %66 : vector<8x32xf32>
    %69 = math.exp %68 : vector<8x32xf32>
    %cst_23 = arith.constant 1.000000e+00 : f32
    %70 = vector.broadcast %cst_23 : f32 to vector<8x32xf32>
    %71 = arith.addf %70, %69 : vector<8x32xf32>
    %72 = arith.divf %70, %71 : vector<8x32xf32>
    %cst_24 = arith.constant 0.000000e+00 : f32
    %73 = vector.broadcast %cst_24 : f32 to vector<8x32xf32>
    %74 = arith.subf %73, %65 : vector<8x32xf32>
    %cst_25 = arith.constant 0.000000e+00 : f32
    %75 = vector.broadcast %cst_25 : f32 to vector<8x32xf32>
    %76 = arith.maximumf %74, %75 : vector<8x32xf32>
    %77 = vector.broadcast %cst_25 : f32 to vector<8x32xf32>
    %78 = arith.subf %74, %77 : vector<8x32xf32>
    %79 = arith.cmpf one, %78, %78 : vector<8x32xf32>
    %80 = vector.broadcast %cst_25 : f32 to vector<8x32xf32>
    %81 = arith.addf %74, %80 : vector<8x32xf32>
    %82 = math.absf %78 : vector<8x32xf32>
    %cst_26 = arith.constant 0.000000e+00 : f32
    %83 = vector.broadcast %cst_26 : f32 to vector<8x32xf32>
    %84 = arith.subf %83, %82 : vector<8x32xf32>
    %85 = math.exp %84 : vector<8x32xf32>
    %86 = math.log1p %85 : vector<8x32xf32>
    %87 = arith.addf %76, %86 : vector<8x32xf32>
    %88 = arith.select %79, %81, %87 : vector<8x32xi1>, vector<8x32xf32>
    %cst_27 = arith.constant 0.000000e+00 : f32
    %89 = vector.broadcast %cst_27 : f32 to vector<8x32xf32>
    %90 = arith.subf %89, %88 : vector<8x32xf32>
    %91 = math.exp %90 : vector<8x32xf32>
    %92 = arith.addf %90, %43 : vector<8x32xf32>
    %93 = arith.maximumf %92, %64 : vector<8x32xf32>
    %94 = arith.subf %64, %93 : vector<8x32xf32>
    %95 = math.exp %94 : vector<8x32xf32>
    %96 = arith.mulf %91, %48 : vector<8x32xf32>
    %97 = arith.mulf %95, %67 : vector<8x32xf32>
    %98 = arith.addf %96, %97 : vector<8x32xf32>
    %99 = arith.mulf %91, %50 : vector<8x32xf32>
    %100 = arith.addf %99, %95 : vector<8x32xf32>
    %101 = arith.divf %98, %100 : vector<8x32xf32>
    %102 = arith.mulf %72, %101 : vector<8x32xf32>
    %103 = tpu.concatenate %102, %98, %100, %93 in 1 : vector<8x32xf32>, vector<8x32xf32>, vector<8x32xf32>, vector<8x32xf32> -> vector<8x128xf32>
    %104 = arith.index_cast %c1_i32 : i32 to index
    %c0_28 = arith.constant 0 : index
    %c0_29 = arith.constant 0 : index
    %105 = vector.load %arg4[%104, %c0_28, %c0_29] : memref<8x8x128xf32, #tpu.memory_space<vmem>>, vector<1x8x128xf32>
    %106 = vector.shape_cast %105 : vector<1x8x128xf32> to vector<8x128xf32>
    %107 = vector.shape_cast %103 : vector<8x128xf32> to vector<1x8x128xf32>
    tpu.vector_store %arg4[%104, %c0_28, %c0_29], %107 {strides = array<i32>} : memref<8x8x128xf32, #tpu.memory_space<vmem>>, vector<1x8x128xf32>,
    %c2_i32 = arith.constant 2 : i32
    %108 = arith.index_cast %c2_i32 : i32 to index
    %c0_30 = arith.constant 0 : index
    %c0_31 = arith.constant 0 : index
    %109 = vector.load %arg2[%108, %c0_30, %c0_31] : memref<8x8x128xf32, #tpu.memory_space<vmem>>, vector<1x8x128xf32>
    %110 = vector.shape_cast %109 : vector<1x8x128xf32> to vector<8x128xf32>
    %cst_32 = arith.constant dense<0.000000e+00> : vector<8x128xf32>
    %111 = tpu.matmul %102, %3, %cst_32 {dimension_numbers = #tpu.dot_dimension_numbers<[1], [0], [0], [1], [0, 0, 1, 1], [], []>} : vector<8x32xf32>, vector<32x128xf32>, vector<8x128xf32> -> vector<8x128xf32>
    %112 = arith.addf %110, %111 : vector<8x128xf32>
    %113 = vector.extract_strided_slice %112 {offsets = [0, 0], sizes = [8, 32], strides = [1, 1]} : vector<8x128xf32> to vector<8x32xf32>
    %114 = vector.extract_strided_slice %112 {offsets = [0, 32], sizes = [8, 32], strides = [1, 1]} : vector<8x128xf32> to vector<8x32xf32>
    %115 = vector.extract_strided_slice %112 {offsets = [0, 64], sizes = [8, 32], strides = [1, 1]} : vector<8x128xf32> to vector<8x32xf32>
    %116 = vector.extract_strided_slice %112 {offsets = [0, 96], sizes = [8, 32], strides = [1, 1]} : vector<8x128xf32> to vector<8x32xf32>
    %117 = math.tanh %113 : vector<8x32xf32>
    %118 = arith.negf %116 : vector<8x32xf32>
    %119 = math.exp %118 : vector<8x32xf32>
    %cst_33 = arith.constant 1.000000e+00 : f32
    %120 = vector.broadcast %cst_33 : f32 to vector<8x32xf32>
    %121 = arith.addf %120, %119 : vector<8x32xf32>
    %122 = arith.divf %120, %121 : vector<8x32xf32>
    %cst_34 = arith.constant 0.000000e+00 : f32
    %123 = vector.broadcast %cst_34 : f32 to vector<8x32xf32>
    %124 = arith.subf %123, %115 : vector<8x32xf32>
    %cst_35 = arith.constant 0.000000e+00 : f32
    %125 = vector.broadcast %cst_35 : f32 to vector<8x32xf32>
    %126 = arith.maximumf %124, %125 : vector<8x32xf32>
    %127 = vector.broadcast %cst_35 : f32 to vector<8x32xf32>
    %128 = arith.subf %124, %127 : vector<8x32xf32>
    %129 = arith.cmpf one, %128, %128 : vector<8x32xf32>
    %130 = vector.broadcast %cst_35 : f32 to vector<8x32xf32>
    %131 = arith.addf %124, %130 : vector<8x32xf32>
    %132 = math.absf %128 : vector<8x32xf32>
    %cst_36 = arith.constant 0.000000e+00 : f32
    %133 = vector.broadcast %cst_36 : f32 to vector<8x32xf32>
    %134 = arith.subf %133, %132 : vector<8x32xf32>
    %135 = math.exp %134 : vector<8x32xf32>
    %136 = math.log1p %135 : vector<8x32xf32>
    %137 = arith.addf %126, %136 : vector<8x32xf32>
    %138 = arith.select %129, %131, %137 : vector<8x32xi1>, vector<8x32xf32>
    %cst_37 = arith.constant 0.000000e+00 : f32
    %139 = vector.broadcast %cst_37 : f32 to vector<8x32xf32>
    %140 = arith.subf %139, %138 : vector<8x32xf32>
    %141 = math.exp %140 : vector<8x32xf32>
    %142 = arith.addf %140, %93 : vector<8x32xf32>
    %143 = arith.maximumf %142, %114 : vector<8x32xf32>
    %144 = arith.subf %114, %143 : vector<8x32xf32>
    %145 = math.exp %144 : vector<8x32xf32>
    %146 = arith.mulf %141, %98 : vector<8x32xf32>
    %147 = arith.mulf %145, %117 : vector<8x32xf32>
    %148 = arith.addf %146, %147 : vector<8x32xf32>
    %149 = arith.mulf %141, %100 : vector<8x32xf32>
    %150 = arith.addf %149, %145 : vector<8x32xf32>
    %151 = arith.divf %148, %150 : vector<8x32xf32>
    %152 = arith.mulf %122, %151 : vector<8x32xf32>
    %153 = tpu.concatenate %152, %148, %150, %143 in 1 : vector<8x32xf32>, vector<8x32xf32>, vector<8x32xf32>, vector<8x32xf32> -> vector<8x128xf32>
    %154 = arith.index_cast %c2_i32 : i32 to index
    %c0_38 = arith.constant 0 : index
    %c0_39 = arith.constant 0 : index
    %155 = vector.load %arg4[%154, %c0_38, %c0_39] : memref<8x8x128xf32, #tpu.memory_space<vmem>>, vector<1x8x128xf32>
    %156 = vector.shape_cast %155 : vector<1x8x128xf32> to vector<8x128xf32>
    %157 = vector.shape_cast %153 : vector<8x128xf32> to vector<1x8x128xf32>
    tpu.vector_store %arg4[%154, %c0_38, %c0_39], %157 {strides = array<i32>} : memref<8x8x128xf32, #tpu.memory_space<vmem>>, vector<1x8x128xf32>,
    %c3_i32 = arith.constant 3 : i32
    %158 = arith.index_cast %c3_i32 : i32 to index
    %c0_40 = arith.constant 0 : index
    %c0_41 = arith.constant 0 : index
    %159 = vector.load %arg2[%158, %c0_40, %c0_41] : memref<8x8x128xf32, #tpu.memory_space<vmem>>, vector<1x8x128xf32>
    %160 = vector.shape_cast %159 : vector<1x8x128xf32> to vector<8x128xf32>
    %cst_42 = arith.constant dense<0.000000e+00> : vector<8x128xf32>
    %161 = tpu.matmul %152, %3, %cst_42 {dimension_numbers = #tpu.dot_dimension_numbers<[1], [0], [0], [1], [0, 0, 1, 1], [], []>} : vector<8x32xf32>, vector<32x128xf32>, vector<8x128xf32> -> vector<8x128xf32>
    %162 = arith.addf %160, %161 : vector<8x128xf32>
    %163 = vector.extract_strided_slice %162 {offsets = [0, 0], sizes = [8, 32], strides = [1, 1]} : vector<8x128xf32> to vector<8x32xf32>
    %164 = vector.extract_strided_slice %162 {offsets = [0, 32], sizes = [8, 32], strides = [1, 1]} : vector<8x128xf32> to vector<8x32xf32>
    %165 = vector.extract_strided_slice %162 {offsets = [0, 64], sizes = [8, 32], strides = [1, 1]} : vector<8x128xf32> to vector<8x32xf32>
    %166 = vector.extract_strided_slice %162 {offsets = [0, 96], sizes = [8, 32], strides = [1, 1]} : vector<8x128xf32> to vector<8x32xf32>
    %167 = math.tanh %163 : vector<8x32xf32>
    %168 = arith.negf %166 : vector<8x32xf32>
    %169 = math.exp %168 : vector<8x32xf32>
    %cst_43 = arith.constant 1.000000e+00 : f32
    %170 = vector.broadcast %cst_43 : f32 to vector<8x32xf32>
    %171 = arith.addf %170, %169 : vector<8x32xf32>
    %172 = arith.divf %170, %171 : vector<8x32xf32>
    %cst_44 = arith.constant 0.000000e+00 : f32
    %173 = vector.broadcast %cst_44 : f32 to vector<8x32xf32>
    %174 = arith.subf %173, %165 : vector<8x32xf32>
    %cst_45 = arith.constant 0.000000e+00 : f32
    %175 = vector.broadcast %cst_45 : f32 to vector<8x32xf32>
    %176 = arith.maximumf %174, %175 : vector<8x32xf32>
    %177 = vector.broadcast %cst_45 : f32 to vector<8x32xf32>
    %178 = arith.subf %174, %177 : vector<8x32xf32>
    %179 = arith.cmpf one, %178, %178 : vector<8x32xf32>
    %180 = vector.broadcast %cst_45 : f32 to vector<8x32xf32>
    %181 = arith.addf %174, %180 : vector<8x32xf32>
    %182 = math.absf %178 : vector<8x32xf32>
    %cst_46 = arith.constant 0.000000e+00 : f32
    %183 = vector.broadcast %cst_46 : f32 to vector<8x32xf32>
    %184 = arith.subf %183, %182 : vector<8x32xf32>
    %185 = math.exp %184 : vector<8x32xf32>
    %186 = math.log1p %185 : vector<8x32xf32>
    %187 = arith.addf %176, %186 : vector<8x32xf32>
    %188 = arith.select %179, %181, %187 : vector<8x32xi1>, vector<8x32xf32>
    %cst_47 = arith.constant 0.000000e+00 : f32
    %189 = vector.broadcast %cst_47 : f32 to vector<8x32xf32>
    %190 = arith.subf %189, %188 : vector<8x32xf32>
    %191 = math.exp %190 : vector<8x32xf32>
    %192 = arith.addf %190, %143 : vector<8x32xf32>
    %193 = arith.maximumf %192, %164 : vector<8x32xf32>
    %194 = arith.subf %164, %193 : vector<8x32xf32>
    %195 = math.exp %194 : vector<8x32xf32>
    %196 = arith.mulf %191, %148 : vector<8x32xf32>
    %197 = arith.mulf %195, %167 : vector<8x32xf32>
    %198 = arith.addf %196, %197 : vector<8x32xf32>
    %199 = arith.mulf %191, %150 : vector<8x32xf32>
    %200 = arith.addf %199, %195 : vector<8x32xf32>
    %201 = arith.divf %198, %200 : vector<8x32xf32>
    %202 = arith.mulf %172, %201 : vector<8x32xf32>
    %203 = tpu.concatenate %202, %198, %200, %193 in 1 : vector<8x32xf32>, vector<8x32xf32>, vector<8x32xf32>, vector<8x32xf32> -> vector<8x128xf32>
    %204 = arith.index_cast %c3_i32 : i32 to index
    %c0_48 = arith.constant 0 : index
    %c0_49 = arith.constant 0 : index
    %205 = vector.load %arg4[%204, %c0_48, %c0_49] : memref<8x8x128xf32, #tpu.memory_space<vmem>>, vector<1x8x128xf32>
    %206 = vector.shape_cast %205 : vector<1x8x128xf32> to vector<8x128xf32>
    %207 = vector.shape_cast %203 : vector<8x128xf32> to vector<1x8x128xf32>
    tpu.vector_store %arg4[%204, %c0_48, %c0_49], %207 {strides = array<i32>} : memref<8x8x128xf32, #tpu.memory_space<vmem>>, vector<1x8x128xf32>,
    %c4_i32 = arith.constant 4 : i32
    %208 = arith.index_cast %c4_i32 : i32 to index
    %c0_50 = arith.constant 0 : index
    %c0_51 = arith.constant 0 : index
    %209 = vector.load %arg2[%208, %c0_50, %c0_51] : memref<8x8x128xf32, #tpu.memory_space<vmem>>, vector<1x8x128xf32>
    %210 = vector.shape_cast %209 : vector<1x8x128xf32> to vector<8x128xf32>
    %cst_52 = arith.constant dense<0.000000e+00> : vector<8x128xf32>
    %211 = tpu.matmul %202, %3, %cst_52 {dimension_numbers = #tpu.dot_dimension_numbers<[1], [0], [0], [1], [0, 0, 1, 1], [], []>} : vector<8x32xf32>, vector<32x128xf32>, vector<8x128xf32> -> vector<8x128xf32>
    %212 = arith.addf %210, %211 : vector<8x128xf32>
    %213 = vector.extract_strided_slice %212 {offsets = [0, 0], sizes = [8, 32], strides = [1, 1]} : vector<8x128xf32> to vector<8x32xf32>
    %214 = vector.extract_strided_slice %212 {offsets = [0, 32], sizes = [8, 32], strides = [1, 1]} : vector<8x128xf32> to vector<8x32xf32>
    %215 = vector.extract_strided_slice %212 {offsets = [0, 64], sizes = [8, 32], strides = [1, 1]} : vector<8x128xf32> to vector<8x32xf32>
    %216 = vector.extract_strided_slice %212 {offsets = [0, 96], sizes = [8, 32], strides = [1, 1]} : vector<8x128xf32> to vector<8x32xf32>
    %217 = math.tanh %213 : vector<8x32xf32>
    %218 = arith.negf %216 : vector<8x32xf32>
    %219 = math.exp %218 : vector<8x32xf32>
    %cst_53 = arith.constant 1.000000e+00 : f32
    %220 = vector.broadcast %cst_53 : f32 to vector<8x32xf32>
    %221 = arith.addf %220, %219 : vector<8x32xf32>
    %222 = arith.divf %220, %221 : vector<8x32xf32>
    %cst_54 = arith.constant 0.000000e+00 : f32
    %223 = vector.broadcast %cst_54 : f32 to vector<8x32xf32>
    %224 = arith.subf %223, %215 : vector<8x32xf32>
    %cst_55 = arith.constant 0.000000e+00 : f32
    %225 = vector.broadcast %cst_55 : f32 to vector<8x32xf32>
    %226 = arith.maximumf %224, %225 : vector<8x32xf32>
    %227 = vector.broadcast %cst_55 : f32 to vector<8x32xf32>
    %228 = arith.subf %224, %227 : vector<8x32xf32>
    %229 = arith.cmpf one, %228, %228 : vector<8x32xf32>
    %230 = vector.broadcast %cst_55 : f32 to vector<8x32xf32>
    %231 = arith.addf %224, %230 : vector<8x32xf32>
    %232 = math.absf %228 : vector<8x32xf32>
    %cst_56 = arith.constant 0.000000e+00 : f32
    %233 = vector.broadcast %cst_56 : f32 to vector<8x32xf32>
    %234 = arith.subf %233, %232 : vector<8x32xf32>
    %235 = math.exp %234 : vector<8x32xf32>
    %236 = math.log1p %235 : vector<8x32xf32>
    %237 = arith.addf %226, %236 : vector<8x32xf32>
    %238 = arith.select %229, %231, %237 : vector<8x32xi1>, vector<8x32xf32>
    %cst_57 = arith.constant 0.000000e+00 : f32
    %239 = vector.broadcast %cst_57 : f32 to vector<8x32xf32>
    %240 = arith.subf %239, %238 : vector<8x32xf32>
    %241 = math.exp %240 : vector<8x32xf32>
    %242 = arith.addf %240, %193 : vector<8x32xf32>
    %243 = arith.maximumf %242, %214 : vector<8x32xf32>
    %244 = arith.subf %214, %243 : vector<8x32xf32>
    %245 = math.exp %244 : vector<8x32xf32>
    %246 = arith.mulf %241, %198 : vector<8x32xf32>
    %247 = arith.mulf %245, %217 : vector<8x32xf32>
    %248 = arith.addf %246, %247 : vector<8x32xf32>
    %249 = arith.mulf %241, %200 : vector<8x32xf32>
    %250 = arith.addf %249, %245 : vector<8x32xf32>
    %251 = arith.divf %248, %250 : vector<8x32xf32>
    %252 = arith.mulf %222, %251 : vector<8x32xf32>
    %253 = tpu.concatenate %252, %248, %250, %243 in 1 : vector<8x32xf32>, vector<8x32xf32>, vector<8x32xf32>, vector<8x32xf32> -> vector<8x128xf32>
    %254 = arith.index_cast %c4_i32 : i32 to index
    %c0_58 = arith.constant 0 : index
    %c0_59 = arith.constant 0 : index
    %255 = vector.load %arg4[%254, %c0_58, %c0_59] : memref<8x8x128xf32, #tpu.memory_space<vmem>>, vector<1x8x128xf32>
    %256 = vector.shape_cast %255 : vector<1x8x128xf32> to vector<8x128xf32>
    %257 = vector.shape_cast %253 : vector<8x128xf32> to vector<1x8x128xf32>
    tpu.vector_store %arg4[%254, %c0_58, %c0_59], %257 {strides = array<i32>} : memref<8x8x128xf32, #tpu.memory_space<vmem>>, vector<1x8x128xf32>,
    %c5_i32 = arith.constant 5 : i32
    %258 = arith.index_cast %c5_i32 : i32 to index
    %c0_60 = arith.constant 0 : index
    %c0_61 = arith.constant 0 : index
    %259 = vector.load %arg2[%258, %c0_60, %c0_61] : memref<8x8x128xf32, #tpu.memory_space<vmem>>, vector<1x8x128xf32>
    %260 = vector.shape_cast %259 : vector<1x8x128xf32> to vector<8x128xf32>
    %cst_62 = arith.constant dense<0.000000e+00> : vector<8x128xf32>
    %261 = tpu.matmul %252, %3, %cst_62 {dimension_numbers = #tpu.dot_dimension_numbers<[1], [0], [0], [1], [0, 0, 1, 1], [], []>} : vector<8x32xf32>, vector<32x128xf32>, vector<8x128xf32> -> vector<8x128xf32>
    %262 = arith.addf %260, %261 : vector<8x128xf32>
    %263 = vector.extract_strided_slice %262 {offsets = [0, 0], sizes = [8, 32], strides = [1, 1]} : vector<8x128xf32> to vector<8x32xf32>
    %264 = vector.extract_strided_slice %262 {offsets = [0, 32], sizes = [8, 32], strides = [1, 1]} : vector<8x128xf32> to vector<8x32xf32>
    %265 = vector.extract_strided_slice %262 {offsets = [0, 64], sizes = [8, 32], strides = [1, 1]} : vector<8x128xf32> to vector<8x32xf32>
    %266 = vector.extract_strided_slice %262 {offsets = [0, 96], sizes = [8, 32], strides = [1, 1]} : vector<8x128xf32> to vector<8x32xf32>
    %267 = math.tanh %263 : vector<8x32xf32>
    %268 = arith.negf %266 : vector<8x32xf32>
    %269 = math.exp %268 : vector<8x32xf32>
    %cst_63 = arith.constant 1.000000e+00 : f32
    %270 = vector.broadcast %cst_63 : f32 to vector<8x32xf32>
    %271 = arith.addf %270, %269 : vector<8x32xf32>
    %272 = arith.divf %270, %271 : vector<8x32xf32>
    %cst_64 = arith.constant 0.000000e+00 : f32
    %273 = vector.broadcast %cst_64 : f32 to vector<8x32xf32>
    %274 = arith.subf %273, %265 : vector<8x32xf32>
    %cst_65 = arith.constant 0.000000e+00 : f32
    %275 = vector.broadcast %cst_65 : f32 to vector<8x32xf32>
    %276 = arith.maximumf %274, %275 : vector<8x32xf32>
    %277 = vector.broadcast %cst_65 : f32 to vector<8x32xf32>
    %278 = arith.subf %274, %277 : vector<8x32xf32>
    %279 = arith.cmpf one, %278, %278 : vector<8x32xf32>
    %280 = vector.broadcast %cst_65 : f32 to vector<8x32xf32>
    %281 = arith.addf %274, %280 : vector<8x32xf32>
    %282 = math.absf %278 : vector<8x32xf32>
    %cst_66 = arith.constant 0.000000e+00 : f32
    %283 = vector.broadcast %cst_66 : f32 to vector<8x32xf32>
    %284 = arith.subf %283, %282 : vector<8x32xf32>
    %285 = math.exp %284 : vector<8x32xf32>
    %286 = math.log1p %285 : vector<8x32xf32>
    %287 = arith.addf %276, %286 : vector<8x32xf32>
    %288 = arith.select %279, %281, %287 : vector<8x32xi1>, vector<8x32xf32>
    %cst_67 = arith.constant 0.000000e+00 : f32
    %289 = vector.broadcast %cst_67 : f32 to vector<8x32xf32>
    %290 = arith.subf %289, %288 : vector<8x32xf32>
    %291 = math.exp %290 : vector<8x32xf32>
    %292 = arith.addf %290, %243 : vector<8x32xf32>
    %293 = arith.maximumf %292, %264 : vector<8x32xf32>
    %294 = arith.subf %264, %293 : vector<8x32xf32>
    %295 = math.exp %294 : vector<8x32xf32>
    %296 = arith.mulf %291, %248 : vector<8x32xf32>
    %297 = arith.mulf %295, %267 : vector<8x32xf32>
    %298 = arith.addf %296, %297 : vector<8x32xf32>
    %299 = arith.mulf %291, %250 : vector<8x32xf32>
    %300 = arith.addf %299, %295 : vector<8x32xf32>
    %301 = arith.divf %298, %300 : vector<8x32xf32>
    %302 = arith.mulf %272, %301 : vector<8x32xf32>
    %303 = tpu.concatenate %302, %298, %300, %293 in 1 : vector<8x32xf32>, vector<8x32xf32>, vector<8x32xf32>, vector<8x32xf32> -> vector<8x128xf32>
    %304 = arith.index_cast %c5_i32 : i32 to index
    %c0_68 = arith.constant 0 : index
    %c0_69 = arith.constant 0 : index
    %305 = vector.load %arg4[%304, %c0_68, %c0_69] : memref<8x8x128xf32, #tpu.memory_space<vmem>>, vector<1x8x128xf32>
    %306 = vector.shape_cast %305 : vector<1x8x128xf32> to vector<8x128xf32>
    %307 = vector.shape_cast %303 : vector<8x128xf32> to vector<1x8x128xf32>
    tpu.vector_store %arg4[%304, %c0_68, %c0_69], %307 {strides = array<i32>} : memref<8x8x128xf32, #tpu.memory_space<vmem>>, vector<1x8x128xf32>,
    %c6_i32 = arith.constant 6 : i32
    %308 = arith.index_cast %c6_i32 : i32 to index
    %c0_70 = arith.constant 0 : index
    %c0_71 = arith.constant 0 : index
    %309 = vector.load %arg2[%308, %c0_70, %c0_71] : memref<8x8x128xf32, #tpu.memory_space<vmem>>, vector<1x8x128xf32>
    %310 = vector.shape_cast %309 : vector<1x8x128xf32> to vector<8x128xf32>
    %cst_72 = arith.constant dense<0.000000e+00> : vector<8x128xf32>
    %311 = tpu.matmul %302, %3, %cst_72 {dimension_numbers = #tpu.dot_dimension_numbers<[1], [0], [0], [1], [0, 0, 1, 1], [], []>} : vector<8x32xf32>, vector<32x128xf32>, vector<8x128xf32> -> vector<8x128xf32>
    %312 = arith.addf %310, %311 : vector<8x128xf32>
    %313 = vector.extract_strided_slice %312 {offsets = [0, 0], sizes = [8, 32], strides = [1, 1]} : vector<8x128xf32> to vector<8x32xf32>
    %314 = vector.extract_strided_slice %312 {offsets = [0, 32], sizes = [8, 32], strides = [1, 1]} : vector<8x128xf32> to vector<8x32xf32>
    %315 = vector.extract_strided_slice %312 {offsets = [0, 64], sizes = [8, 32], strides = [1, 1]} : vector<8x128xf32> to vector<8x32xf32>
    %316 = vector.extract_strided_slice %312 {offsets = [0, 96], sizes = [8, 32], strides = [1, 1]} : vector<8x128xf32> to vector<8x32xf32>
    %317 = math.tanh %313 : vector<8x32xf32>
    %318 = arith.negf %316 : vector<8x32xf32>
    %319 = math.exp %318 : vector<8x32xf32>
    %cst_73 = arith.constant 1.000000e+00 : f32
    %320 = vector.broadcast %cst_73 : f32 to vector<8x32xf32>
    %321 = arith.addf %320, %319 : vector<8x32xf32>
    %322 = arith.divf %320, %321 : vector<8x32xf32>
    %cst_74 = arith.constant 0.000000e+00 : f32
    %323 = vector.broadcast %cst_74 : f32 to vector<8x32xf32>
    %324 = arith.subf %323, %315 : vector<8x32xf32>
    %cst_75 = arith.constant 0.000000e+00 : f32
    %325 = vector.broadcast %cst_75 : f32 to vector<8x32xf32>
    %326 = arith.maximumf %324, %325 : vector<8x32xf32>
    %327 = vector.broadcast %cst_75 : f32 to vector<8x32xf32>
    %328 = arith.subf %324, %327 : vector<8x32xf32>
    %329 = arith.cmpf one, %328, %328 : vector<8x32xf32>
    %330 = vector.broadcast %cst_75 : f32 to vector<8x32xf32>
    %331 = arith.addf %324, %330 : vector<8x32xf32>
    %332 = math.absf %328 : vector<8x32xf32>
    %cst_76 = arith.constant 0.000000e+00 : f32
    %333 = vector.broadcast %cst_76 : f32 to vector<8x32xf32>
    %334 = arith.subf %333, %332 : vector<8x32xf32>
    %335 = math.exp %334 : vector<8x32xf32>
    %336 = math.log1p %335 : vector<8x32xf32>
    %337 = arith.addf %326, %336 : vector<8x32xf32>
    %338 = arith.select %329, %331, %337 : vector<8x32xi1>, vector<8x32xf32>
    %cst_77 = arith.constant 0.000000e+00 : f32
    %339 = vector.broadcast %cst_77 : f32 to vector<8x32xf32>
    %340 = arith.subf %339, %338 : vector<8x32xf32>
    %341 = math.exp %340 : vector<8x32xf32>
    %342 = arith.addf %340, %293 : vector<8x32xf32>
    %343 = arith.maximumf %342, %314 : vector<8x32xf32>
    %344 = arith.subf %314, %343 : vector<8x32xf32>
    %345 = math.exp %344 : vector<8x32xf32>
    %346 = arith.mulf %341, %298 : vector<8x32xf32>
    %347 = arith.mulf %345, %317 : vector<8x32xf32>
    %348 = arith.addf %346, %347 : vector<8x32xf32>
    %349 = arith.mulf %341, %300 : vector<8x32xf32>
    %350 = arith.addf %349, %345 : vector<8x32xf32>
    %351 = arith.divf %348, %350 : vector<8x32xf32>
    %352 = arith.mulf %322, %351 : vector<8x32xf32>
    %353 = tpu.concatenate %352, %348, %350, %343 in 1 : vector<8x32xf32>, vector<8x32xf32>, vector<8x32xf32>, vector<8x32xf32> -> vector<8x128xf32>
    %354 = arith.index_cast %c6_i32 : i32 to index
    %c0_78 = arith.constant 0 : index
    %c0_79 = arith.constant 0 : index
    %355 = vector.load %arg4[%354, %c0_78, %c0_79] : memref<8x8x128xf32, #tpu.memory_space<vmem>>, vector<1x8x128xf32>
    %356 = vector.shape_cast %355 : vector<1x8x128xf32> to vector<8x128xf32>
    %357 = vector.shape_cast %353 : vector<8x128xf32> to vector<1x8x128xf32>
    tpu.vector_store %arg4[%354, %c0_78, %c0_79], %357 {strides = array<i32>} : memref<8x8x128xf32, #tpu.memory_space<vmem>>, vector<1x8x128xf32>,
    %c7_i32 = arith.constant 7 : i32
    %358 = arith.index_cast %c7_i32 : i32 to index
    %c0_80 = arith.constant 0 : index
    %c0_81 = arith.constant 0 : index
    %359 = vector.load %arg2[%358, %c0_80, %c0_81] : memref<8x8x128xf32, #tpu.memory_space<vmem>>, vector<1x8x128xf32>
    %360 = vector.shape_cast %359 : vector<1x8x128xf32> to vector<8x128xf32>
    %cst_82 = arith.constant dense<0.000000e+00> : vector<8x128xf32>
    %361 = tpu.matmul %352, %3, %cst_82 {dimension_numbers = #tpu.dot_dimension_numbers<[1], [0], [0], [1], [0, 0, 1, 1], [], []>} : vector<8x32xf32>, vector<32x128xf32>, vector<8x128xf32> -> vector<8x128xf32>
    %362 = arith.addf %360, %361 : vector<8x128xf32>
    %363 = vector.extract_strided_slice %362 {offsets = [0, 0], sizes = [8, 32], strides = [1, 1]} : vector<8x128xf32> to vector<8x32xf32>
    %364 = vector.extract_strided_slice %362 {offsets = [0, 32], sizes = [8, 32], strides = [1, 1]} : vector<8x128xf32> to vector<8x32xf32>
    %365 = vector.extract_strided_slice %362 {offsets = [0, 64], sizes = [8, 32], strides = [1, 1]} : vector<8x128xf32> to vector<8x32xf32>
    %366 = vector.extract_strided_slice %362 {offsets = [0, 96], sizes = [8, 32], strides = [1, 1]} : vector<8x128xf32> to vector<8x32xf32>
    %367 = math.tanh %363 : vector<8x32xf32>
    %368 = arith.negf %366 : vector<8x32xf32>
    %369 = math.exp %368 : vector<8x32xf32>
    %cst_83 = arith.constant 1.000000e+00 : f32
    %370 = vector.broadcast %cst_83 : f32 to vector<8x32xf32>
    %371 = arith.addf %370, %369 : vector<8x32xf32>
    %372 = arith.divf %370, %371 : vector<8x32xf32>
    %cst_84 = arith.constant 0.000000e+00 : f32
    %373 = vector.broadcast %cst_84 : f32 to vector<8x32xf32>
    %374 = arith.subf %373, %365 : vector<8x32xf32>
    %cst_85 = arith.constant 0.000000e+00 : f32
    %375 = vector.broadcast %cst_85 : f32 to vector<8x32xf32>
    %376 = arith.maximumf %374, %375 : vector<8x32xf32>
    %377 = vector.broadcast %cst_85 : f32 to vector<8x32xf32>
    %378 = arith.subf %374, %377 : vector<8x32xf32>
    %379 = arith.cmpf one, %378, %378 : vector<8x32xf32>
    %380 = vector.broadcast %cst_85 : f32 to vector<8x32xf32>
    %381 = arith.addf %374, %380 : vector<8x32xf32>
    %382 = math.absf %378 : vector<8x32xf32>
    %cst_86 = arith.constant 0.000000e+00 : f32
    %383 = vector.broadcast %cst_86 : f32 to vector<8x32xf32>
    %384 = arith.subf %383, %382 : vector<8x32xf32>
    %385 = math.exp %384 : vector<8x32xf32>
    %386 = math.log1p %385 : vector<8x32xf32>
    %387 = arith.addf %376, %386 : vector<8x32xf32>
    %388 = arith.select %379, %381, %387 : vector<8x32xi1>, vector<8x32xf32>
    %cst_87 = arith.constant 0.000000e+00 : f32
    %389 = vector.broadcast %cst_87 : f32 to vector<8x32xf32>
    %390 = arith.subf %389, %388 : vector<8x32xf32>
    %391 = math.exp %390 : vector<8x32xf32>
    %392 = arith.addf %390, %343 : vector<8x32xf32>
    %393 = arith.maximumf %392, %364 : vector<8x32xf32>
    %394 = arith.subf %364, %393 : vector<8x32xf32>
    %395 = math.exp %394 : vector<8x32xf32>
    %396 = arith.mulf %391, %348 : vector<8x32xf32>
    %397 = arith.mulf %395, %367 : vector<8x32xf32>
    %398 = arith.addf %396, %397 : vector<8x32xf32>
    %399 = arith.mulf %391, %350 : vector<8x32xf32>
    %400 = arith.addf %399, %395 : vector<8x32xf32>
    %401 = arith.divf %398, %400 : vector<8x32xf32>
    %402 = arith.mulf %372, %401 : vector<8x32xf32>
    %403 = tpu.concatenate %402, %398, %400, %393 in 1 : vector<8x32xf32>, vector<8x32xf32>, vector<8x32xf32>, vector<8x32xf32> -> vector<8x128xf32>
    %404 = arith.index_cast %c7_i32 : i32 to index
    %c0_88 = arith.constant 0 : index
    %c0_89 = arith.constant 0 : index
    %405 = vector.load %arg4[%404, %c0_88, %c0_89] : memref<8x8x128xf32, #tpu.memory_space<vmem>>, vector<1x8x128xf32>
    %406 = vector.shape_cast %405 : vector<1x8x128xf32> to vector<8x128xf32>
    %407 = vector.shape_cast %403 : vector<8x128xf32> to vector<1x8x128xf32>
    tpu.vector_store %arg4[%404, %c0_88, %c0_89], %407 {strides = array<i32>} : memref<8x8x128xf32, #tpu.memory_space<vmem>>, vector<1x8x128xf32>,
    %c8_i32 = arith.constant 8 : i32
    %c0_90 = arith.constant 0 : index
    %c0_91 = arith.constant 0 : index
    %408 = vector.load %arg5[%c0_90, %c0_91] : memref<8x32xf32, #tpu.memory_space<vmem>>, vector<8x32xf32>
    tpu.vector_store %arg5[%c0_90, %c0_91], %402 {strides = array<i32>} : memref<8x32xf32, #tpu.memory_space<vmem>>, vector<8x32xf32>,
    %c0_92 = arith.constant 0 : index
    %c0_93 = arith.constant 0 : index
    %409 = vector.load %arg6[%c0_92, %c0_93] : memref<8x32xf32, #tpu.memory_space<vmem>>, vector<8x32xf32>
    tpu.vector_store %arg6[%c0_92, %c0_93], %398 {strides = array<i32>} : memref<8x32xf32, #tpu.memory_space<vmem>>, vector<8x32xf32>,
    %c0_94 = arith.constant 0 : index
    %c0_95 = arith.constant 0 : index
    %410 = vector.load %arg7[%c0_94, %c0_95] : memref<8x32xf32, #tpu.memory_space<vmem>>, vector<8x32xf32>
    tpu.vector_store %arg7[%c0_94, %c0_95], %400 {strides = array<i32>} : memref<8x32xf32, #tpu.memory_space<vmem>>, vector<8x32xf32>,
    %c0_96 = arith.constant 0 : index
    %c0_97 = arith.constant 0 : index
    %411 = vector.load %arg8[%c0_96, %c0_97] : memref<8x32xf32, #tpu.memory_space<vmem>>, vector<8x32xf32>
    tpu.vector_store %arg8[%c0_96, %c0_97], %393 {strides = array<i32>} : memref<8x32xf32, #tpu.memory_space<vmem>>, vector<8x32xf32>,
    return
  }
  func.func @transform_0(%arg0: i32, %arg1: i32) -> (i32, i32, i32) {
    %c0_i32 = arith.constant 0 : i32
    %c0_i32_0 = arith.constant 0 : i32
    return %arg1, %arg0, %c0_i32 : i32, i32, i32
  }
  func.func @transform_1(%arg0: i32, %arg1: i32) -> (i32, i32) {
    %c0_i32 = arith.constant 0 : i32
    %c0_i32_0 = arith.constant 0 : i32
    %c0_i32_1 = arith.constant 0 : i32
    return %c0_i32, %c0_i32_0 : i32, i32
  }
  func.func @transform_2(%arg0: i32, %arg1: i32) -> (i32, i32, i32) {
    %c0_i32 = arith.constant 0 : i32
    %c0_i32_0 = arith.constant 0 : i32
    return %arg1, %arg0, %c0_i32 : i32, i32, i32
  }
}

</mosaic_0001>

<bundles_post_ra>
// kernel: tpu_custom_call.1
= control target key start
LH: loop header
LB: loop body
LE: loop exit
PB: predicated region body
PF: predicated region fallthrough
CT: control target
= control target key end

     0   :  { %7 = vsyncpa [#allocation7], 0  ;;  %s2157_s0 = inlined_call_operand.hbm [shape: f32[8,8,128], index: 0, kind: input, shape index: {}]   ;;  %s2158_s1 = inlined_call_operand.hbm [shape: f32[32,128], index: 1, kind: input, shape index: {}]   ;;  %s2159_s2 = inlined_call_operand.hbm [shape: f32[8,8,128], index: 2, kind: output, shape index: {}]  }
   0x1   :  { %8 = vsyncpa [#allocation10], 0 }
   0x2   :  { %9 = vsyncpa [#allocation8], 0  ;;  %s1762_s9 = smov [#allocation6]   ;;  %s1690_s13 = scalar_lea.hbm %s2157_s0, 1024 }
   0x3   :  { %s15_s10 = sshll.u32 %s1762_s9, 4  ;;  %p1691_p0 = scmp.ne.s32.totalorder %s2157_s0, %s1690_s13  ;;  %s16_s10 = int_to_ptr.vmem [resolvable:$true] %s15_s10 }
   0x4   :  { %p1694_p1 = scmp.lt.u32.totalorder %s1690_s13, %s2157_s0 }
   0x6   :  { %p1696_p2 = pnand %p1694_p1, %p1691_p0 }
   0x8   :  { %1699 = shalt.err (!%p1696_p2)
}
   0x9   :  { %s1700_s18 = scalar_lea.vmem %s16_s10, 1024  ;;  %p1705_p4 = scmp.lt.s32.totalorder %s16_s10, %s16_s10 }
   0xa   :  { %p1701_p3 = scmp.ne.s32.totalorder %s16_s10, %s1700_s18  ;;  %p1706_p5 = scmp.lt.s32.totalorder %s1700_s18, %s1700_s18 }
   0xc   :  { %p1707_p6 = por %p1706_p5, %p1705_p4 }
   0xe   :  { %p1708_p7 = pnand %p1707_p6, %p1701_p3 }
  0x10   :  { %1711 = shalt.err (!%p1708_p7)
}
  0x11   :  { %s1763_s19 = smov 128   ;;  %s1764_s20 = smov 8  }
  0x12   :  { %21 = dma.hbm_to_vmem [thread:$0]  %s2157_s0, 1024, %s16_s10, [#allocation7], %s1763_s19, %s1763_s19, %s1764_s20  }
  0x13   :  { %s1765_s23 = smov [#allocation9]   ;;  %s1712_s27 = scalar_lea.hbm %s2158_s1, 512 }
  0x14   :  { %s27_s24 = sshll.u32 %s1765_s23, 4  ;;  %p1713_p8 = scmp.ne.s32.totalorder %s2158_s1, %s1712_s27  ;;  %s28_s24 = int_to_ptr.vmem [resolvable:$true] %s27_s24 }
  0x15   :  { %p1716_p9 = scmp.lt.u32.totalorder %s1712_s27, %s2158_s1 }
  0x17   :  { %p1718_p10 = pnand %p1716_p9, %p1713_p8 }
  0x19   :  { %1721 = shalt.err (!%p1718_p10)
}
  0x1a   :  { %s1722_s4 = scalar_lea.vmem %s28_s24, 512  ;;  %p1727_p12 = scmp.lt.s32.totalorder %s28_s24, %s28_s24 }
  0x1b   :  { %p1723_p11 = scmp.ne.s32.totalorder %s28_s24, %s1722_s4  ;;  %p1728_p13 = scmp.lt.s32.totalorder %s1722_s4, %s1722_s4 }
  0x1d   :  { %p1729_p0 = por %p1728_p13, %p1727_p12 }
  0x1f   :  { %p1730_p1 = pnand %p1729_p0, %p1723_p11 }
  0x21   :  { %1733 = shalt.err (!%p1730_p1)
}
  0x22   :  { %33 = dma.hbm_to_vmem [thread:$0]  %s2158_s1, 512, %s28_s24, [#allocation10], %s1763_s19, %s1763_s19, %s1764_s20  }
  0x23   :  { %1756 = dma.done.wait [#allocation7], 1024  }
  0x24   :  { %1757 = vsyncadd [#allocation7], 4294966272 }
  0x25   :  { %1758 = dma.done.wait [#allocation10], 512  }
  0x26   :  { %1759 = vsyncadd [#allocation10], 4294966784  ;;  %vm44_vm0 = vcmask 261120   ;;  %v1766_v0 = vmov 0.0|0.0   ;;  %vm1767_vm1 = vmmov 0   ;;  %v1768_v1 = vmov 0.0  }
  0x27   :  { %1503 = vmatprep.subr.bf16.mxu0 %v1766_v0  ;;  %1423 = vmatprep.mubr.msk.f32.mxu0 %vm1767_vm1, %v1768_v1  ;;  %45 = vst.msk [vmem:[#allocation2] sm:$0xff] %vm44_vm0, %v1768_v1  ;;  %46 = vst.msk [vmem:[#allocation3] sm:$0xff] %vm44_vm0, %v1768_v1  ;;  %v49_v2 = vld [vmem:[#allocation9] sm:$0xff]  ;;  %v50_v3 = vld [vmem:[#allocation9 + $0x8] sm:$0xff]  ;;  %s1769_s1 = smov 64   ;;  %s1770_s6 = smov 32  }
  0x28   :  { %47 = vst.msk [vmem:[#allocation4] sm:$0xff] %vm44_vm0, %v1768_v1  ;;  %48 = vst.msk [vmem:[#allocation5] sm:$0xff] %vm44_vm0, %v1768_v1  ;;  %1509 = vmatprep.subr.bf16.mxu1 %v1766_v0  ;;  %1434 = vmatprep.mubr.msk.f32.mxu1 %vm1767_vm1, %v1768_v1  ;;  %v51_v4 = vld [vmem:[#allocation9 + $0x10] sm:$0xff]  ;;  %v1832_v5 = vpack.c.bf16 %v50_v3, %v49_v2  ;;  %v52_v6 = vld [vmem:[#allocation9 + $0x18] sm:$0xff]  ;;  %s1771_s7 = smov 96   ;;  %s1772_s8 = smov [#allocation11]  }
  0x29   :  { %v1836_v8 = vpack.c.bf16 %v52_v6, %v51_v4  ;;  %v57_v10 = vld [vmem:[#allocation6] sm:$0xff]  ;;  %v229_v63 = vld [vmem:[#allocation6 + $0x8] sm:$0xff]  ;;  %s1346_s9 = sshll.u32 %s1772_s8, 4  ;;  %s1347_s9 = int_to_ptr.vmem [resolvable:$true] %s1346_s9 }
  0x2a   :  { %1505 = vmatpush3.bf16.msra.mxu0 %v1832_v5  ;;  %1511 = vmatpush3.bf16.msra.mxu1 %v1832_v5  ;;  %s1734_s10 = scalar_lea.vmem %s1347_s9, 1024  ;;  %p1739_p3 = scmp.lt.s32.totalorder %s1347_s9, %s1347_s9 }
  0x2b   :  { %1506 = vmatprep.subr.bf16.mxu0 %v1766_v0  ;;  %1512 = vmatprep.subr.bf16.mxu1 %v1766_v0  ;;  %p1735_p2 = scmp.ne.s32.totalorder %s1347_s9, %s1734_s10  ;;  %p1740_p4 = scmp.lt.s32.totalorder %s1734_s10, %s1734_s10 }
  0x2d   :  { %p1741_p5 = por %p1740_p4, %p1739_p3 }
  0x2e   :  { %1508 = vmatpush3.bf16.msra.mxu0 %v1836_v8  ;;  %v53_v9 = vld [vmem:[#allocation2] sm:$0xff]  ;;  %1514 = vmatpush3.bf16.msra.mxu1 %v1836_v8  ;;  %v54_v15 = vld [vmem:[#allocation3] sm:$0xff] }
  0x2f   :  { %v56_v7 = vld [vmem:[#allocation5] sm:$0xff]  ;;  %1515 = vmatprep.subr.bf16.mxu0 %v1766_v0  ;;  %1521 = vmatprep.subr.bf16.mxu1 %v1766_v0  ;;  %v55_v14 = vld [vmem:[#allocation4] sm:$0xff]  ;;  %p1742_p6 = pnand %p1741_p5, %p1735_p2 }
  0x30   :  { %163 = vrot.lane.b32.xlu0 %v56_v7, %s1769_s1 }
  0x31   :  { %1424 = vmatmul.mubr.msk.f32.vlgmr.msra.gmra.mrb[0].mxu0 %vm44_vm0, %v53_v9 }
  0x32   :  { %1517 = vmatpush3.bf16.msra.mxu0 %v1832_v5  ;;  %1445 = vmatprep.mubr.msk.f32.mxu0 %vm1767_vm1, %v1768_v1 }
  0x33   :  { %1518 = vmatprep.subr.bf16.mxu0 %v1766_v0 }
  0x36   :  { %1520 = vmatpush3.bf16.msra.mxu0 %v1836_v8 }
  0x37   :  { %1527 = vmatprep.subr.bf16.mxu0 %v1766_v0 }
  0xa2   :  { %v164_v33 = vpop.permute.xlu0 %163 }
 0x104   :  { %v128_v11 = vpop.f32.mrb[0].mxu0 }
 0x105   :  { %v132_v12 = vadd.f32 %v128_v11, %v57_v10  ;;  %v1425_v13 = vpop.f32.mrb[1].mxu0 }
 0x107   :  { %168 = vrot.lane.b32.xlu0 %v132_v12, %s1770_s6  ;;  %v140_v16 = vsub.f32 0.0, %v132_v12  ;;  %v1360_v56 = vmul.f32 -1.442695, %v132_v12 }
 0x109   :  { %v144_v17 = vand.u32 2147483647, %v140_v16  ;;  %v141_v29 = vmax.f32 %v140_v16, 0.0  ;;  %vm142_vm3 = vcmp.ne.f32.partialorder %v140_v16, %v140_v16 }
 0x10b   :  { %195 = vrot.lane.b32.xlu0 %v55_v14, %s1769_s1  ;;  %v145_v18 = vsub.f32 0.0, %v144_v17 }
 0x10d   :  { %v146_v19 = vmul.f32 1.442695, %v145_v18 }
 0x10f   :  { %180 = vrot.lane.b32.xlu0 %v54_v15, %s1769_s1  ;;  %1562 = vpow2.f32 %v146_v19 }
 0x119   :  { %v1563_v20 = vpop.eup %1562 }
 0x11a   :  { %v148_v21 = vadd.f32 1.0, %v1563_v20  ;;  %v151_v22 = vmul.f32 -0.5, %v1563_v20  ;;  %v154_v25 = vand.u32 2147483647, %v1563_v20 }
 0x11c   :  { %1564 = vlog2.f32 %v148_v21  ;;  %v152_v24 = vadd.f32 1.0, %v151_v22  ;;  %vm155_vm2 = vcmp.lt.f32.partialorder %v154_v25, 0.0004427343 }
 0x11d   :  { %1566 = vtanh.f32 %v132_v12 }
 0x11e   :  { %v153_v27 = vmul.f32 %v1563_v20, %v152_v24 }
 0x126   :  { %v1565_v23 = vpop.eup %1564 }
 0x127   :  { %v150_v26 = vmul.f32 0.6931472, %v1565_v23  ;;  %v1567_v37 = vpop.eup %1566 }
 0x129   :  { %v156_v28 = vsel %vm155_vm2, %v153_v27, %v150_v26 }
 0x12a   :  { %v157_v30 = vadd.f32 %v156_v28, %v141_v29 }
 0x12c   :  { %v158_v31 = vsel %vm142_vm3, %v140_v16, %v157_v30  ;;  %vm225_vm3 = vcmask 785408  }
 0x12d   :  { %v159_v32 = vsub.f32 0.0, %v158_v31 }
 0x12f   :  { %v166_v34 = vadd.f32 %v164_v33, %v159_v32  ;;  %v160_v44 = vmul.f32 1.442695, %v159_v32 }
 0x179   :  { %v169_v35 = vpop.permute.xlu0 %168 }
 0x17a   :  { %v1855_v36 = vmax.f32 %v166_v34, %v169_v35 }
 0x17c   :  { %173 = vrot.lane.b32.xlu1 %v1855_v36, %s1771_s7 }
 0x17d   :  { %v196_v45 = vpop.permute.xlu0 %195 }
 0x180   :  { %185 = vrot.lane.b32.xlu1 %v1567_v37, %s1770_s6 }
 0x181   :  { %v181_v50 = vpop.permute.xlu0 %180 }
 0x1ee   :  { %v174_v38 = vpop.permute.xlu1 %173 }
 0x1ef   :  { %v176_v39 = vsub.f32 %v132_v12, %v174_v38 }
 0x1f1   :  { %v177_v40 = vmul.f32 1.442695, %v176_v39 }
 0x1f2   :  { %v186_v42 = vpop.permute.xlu1 %185 }
 0x1f3   :  { %1568 = vpow2.f32 %v177_v40 }
 0x1f4   :  { %1570 = vpow2.f32 %v160_v44 }
 0x1fd   :  { %v1569_v41 = vpop.eup %1568 }
 0x1fe   :  { %200 = vrot.lane.b32.xlu1 %v1569_v41, %s1770_s6  ;;  %v188_v43 = vmul.f32 %v1569_v41, %v186_v42  ;;  %v1571_v46 = vpop.eup %1570 }
 0x1ff   :  { %v198_v47 = vmul.f32 %v1571_v46, %v196_v45  ;;  %v183_v52 = vmul.f32 %v1571_v46, %v181_v50 }
 0x202   :  { %190 = vrot.lane.b32.xlu1 %v188_v43, %s1770_s6 }
 0x270   :  { %v201_v48 = vpop.permute.xlu1 %200 }
 0x271   :  { %v1862_v49 = vadd.f32 %v201_v48, %v198_v47 }
 0x273   :  { %1572 = vrcp.f32 %v1862_v49 }
 0x274   :  { %v191_v51 = vpop.permute.xlu1 %190  ;;  %1574 = vpow2.f32 %v1360_v56 }
 0x275   :  { %v1865_v53 = vadd.f32 %v191_v51, %v183_v52 }
 0x27d   :  { %v1573_v54 = vpop.eup %1572 }
 0x27e   :  { %v205_v55 = vmul.f32 %v1573_v54, %v1865_v53  ;;  %v1575_v57 = vpop.eup %1574  ;;  %v386_v54 = vld [vmem:[#allocation6 + $0x10] sm:$0xff] }
 0x27f   :  { %v137_v58 = vadd.f32 1.0, %v1575_v57 }
 0x280   :  { %207 = vrot.lane.b32.xlu0 %v205_v55, %s1770_s6 }
 0x281   :  { %1576 = vrcp.f32 %v137_v58 }
 0x28b   :  { %v1577_v59 = vpop.eup %1576 }
 0x2f2   :  { %v208_v60 = vpop.permute.xlu0 %207 }
 0x2f3   :  { %v210_v61 = vmul.f32 %v1577_v59, %v208_v60 }
 0x2f5   :  { %212 = vrot.lane.b32.xlu1 %v210_v61, %s1770_s6 }
 0x367   :  { %v1870_v62 = vpop.permute.xlu1 %212 }
 0x368   :  { %1435 = vmatmul.mubr.msk.f32.vlgmr.msra.gmra.mrb[0].mxu1 %vm44_vm0, %v1870_v62 }
 0x369   :  { %1523 = vmatpush3.bf16.msra.mxu1 %v1832_v5  ;;  %1456 = vmatprep.mubr.msk.f32.mxu1 %vm1767_vm1, %v1768_v1 }
 0x36a   :  { %1524 = vmatprep.subr.bf16.mxu1 %v1766_v0 }
 0x36d   :  { %1526 = vmatpush3.bf16.msra.mxu1 %v1836_v8 }
 0x36e   :  { %1533 = vmatprep.subr.bf16.mxu1 %v1766_v0 }
 0x43b   :  { %v298_v2 = vpop.f32.mrb[0].mxu1 }
 0x43c   :  { %v302_v3 = vadd.f32 %v298_v2, %v229_v63  ;;  %v1436_v4 = vpop.f32.mrb[1].mxu1 }
 0x43e   :  { %1578 = vtanh.f32 %v302_v3  ;;  %334 = vrot.lane.b32.xlu0 %v302_v3, %s1770_s6  ;;  %v310_v7 = vsub.f32 0.0, %v302_v3  ;;  %v1362_v45 = vmul.f32 -1.442695, %v302_v3 }
 0x440   :  { %v314_v9 = vand.u32 2147483647, %v310_v7  ;;  %v311_v21 = vmax.f32 %v310_v7, 0.0  ;;  %vm312_vm5 = vcmp.ne.f32.partialorder %v310_v7, %v310_v7 }
 0x442   :  { %v315_v10 = vsub.f32 0.0, %v314_v9 }
 0x444   :  { %v316_v11 = vmul.f32 1.442695, %v315_v10 }
 0x446   :  { %1580 = vpow2.f32 %v316_v11 }
 0x448   :  { %v1579_v6 = vpop.eup %1578 }
 0x449   :  { %347 = vrot.lane.b32.xlu0 %v1579_v6, %s1770_s6 }
 0x450   :  { %v1581_v12 = vpop.eup %1580 }
 0x451   :  { %v318_v13 = vadd.f32 1.0, %v1581_v12  ;;  %v321_v14 = vmul.f32 -0.5, %v1581_v12  ;;  %v324_v17 = vand.u32 2147483647, %v1581_v12 }
 0x453   :  { %1582 = vlog2.f32 %v318_v13  ;;  %v322_v16 = vadd.f32 1.0, %v321_v14  ;;  %vm325_vm4 = vcmp.lt.f32.partialorder %v324_v17, 0.0004427343 }
 0x455   :  { %v323_v19 = vmul.f32 %v1581_v12, %v322_v16 }
 0x45d   :  { %v1583_v15 = vpop.eup %1582 }
 0x45e   :  { %v320_v18 = vmul.f32 0.6931472, %v1583_v15 }
 0x460   :  { %v326_v20 = vsel %vm325_vm4, %v323_v19, %v320_v18  ;;  %vm223_vm4 = vcmask 523264  }
 0x461   :  { %v327_v22 = vadd.f32 %v326_v20, %v311_v21 }
 0x463   :  { %v328_v23 = vsel %vm312_vm5, %v310_v7, %v327_v22 }
 0x464   :  { %v329_v24 = vsub.f32 0.0, %v328_v23 }
 0x466   :  { %v332_v25 = vadd.f32 %v329_v24, %v1855_v36  ;;  %v330_v34 = vmul.f32 1.442695, %v329_v24 }
 0x4b0   :  { %v335_v26 = vpop.permute.xlu0 %334 }
 0x4b1   :  { %v1883_v27 = vmax.f32 %v332_v25, %v335_v26 }
 0x4b3   :  { %339 = vrot.lane.b32.xlu1 %v1883_v27, %s1771_s7 }
 0x4bb   :  { %v348_v32 = vpop.permute.xlu0 %347 }
 0x525   :  { %v340_v28 = vpop.permute.xlu1 %339 }
 0x526   :  { %v342_v29 = vsub.f32 %v302_v3, %v340_v28 }
 0x528   :  { %v343_v30 = vmul.f32 1.442695, %v342_v29 }
 0x52a   :  { %1584 = vpow2.f32 %v343_v30 }
 0x52b   :  { %1586 = vpow2.f32 %v330_v34 }
 0x534   :  { %v1585_v31 = vpop.eup %1584 }
 0x535   :  { %358 = vrot.lane.b32.xlu1 %v1585_v31, %s1770_s6  ;;  %v350_v33 = vmul.f32 %v1585_v31, %v348_v32  ;;  %v1587_v35 = vpop.eup %1586 }
 0x536   :  { %v356_v37 = vmul.f32 %v1587_v35, %v1862_v49  ;;  %v345_v41 = vmul.f32 %v1587_v35, %v1865_v53 }
 0x537   :  { %352 = vrot.lane.b32.xlu0 %v350_v33, %s1770_s6 }
 0x5a7   :  { %v359_v38 = vpop.permute.xlu1 %358 }
 0x5a8   :  { %v1890_v39 = vadd.f32 %v359_v38, %v356_v37 }
 0x5a9   :  { %v353_v40 = vpop.permute.xlu0 %352 }
 0x5aa   :  { %1588 = vrcp.f32 %v1890_v39  ;;  %v1894_v42 = vadd.f32 %v353_v40, %v345_v41 }
 0x5ab   :  { %1590 = vpow2.f32 %v1362_v45 }
 0x5b4   :  { %v1589_v43 = vpop.eup %1588 }
 0x5b5   :  { %v363_v44 = vmul.f32 %v1589_v43, %v1894_v42  ;;  %v1591_v46 = vpop.eup %1590 }
 0x5b6   :  { %v307_v47 = vadd.f32 1.0, %v1591_v46 }
 0x5b7   :  { %365 = vrot.lane.b32.xlu1 %v363_v44, %s1770_s6 }
 0x5b8   :  { %1592 = vrcp.f32 %v307_v47  ;;  %v543_v47 = vld [vmem:[#allocation6 + $0x18] sm:$0xff] }
 0x5c2   :  { %v1593_v48 = vpop.eup %1592 }
 0x629   :  { %v366_v50 = vpop.permute.xlu1 %365 }
 0x62a   :  { %v368_v51 = vmul.f32 %v1593_v48, %v366_v50 }
 0x62c   :  { %370 = vrot.lane.b32.xlu0 %v368_v51, %s1770_s6 }
 0x69e   :  { %v1899_v52 = vpop.permute.xlu0 %370 }
 0x69f   :  { %1446 = vmatmul.mubr.msk.f32.vlgmr.msra.gmra.mrb[2].mxu0 %vm44_vm0, %v1899_v52 }
 0x6a0   :  { %1529 = vmatpush3.bf16.msra.mxu0 %v1832_v5  ;;  %1467 = vmatprep.mubr.msk.f32.mxu0 %vm1767_vm1, %v1768_v1 }
 0x6a1   :  { %1530 = vmatprep.subr.bf16.mxu0 %v1766_v0 }
 0x6a4   :  { %1532 = vmatpush3.bf16.msra.mxu0 %v1836_v8 }
 0x6a5   :  { %1539 = vmatprep.subr.bf16.mxu0 %v1766_v0 }
 0x772   :  { %v455_v55 = vpop.f32.mrb[2].mxu0 }
 0x773   :  { %v459_v56 = vadd.f32 %v455_v55, %v386_v54  ;;  %v1447_v57 = vpop.f32.mrb[3].mxu0 }
 0x775   :  { %1594 = vtanh.f32 %v459_v56  ;;  %491 = vrot.lane.b32.xlu1 %v459_v56, %s1770_s6  ;;  %v467_v59 = vsub.f32 0.0, %v459_v56  ;;  %v1364_v38 = vmul.f32 -1.442695, %v459_v56 }
 0x777   :  { %v471_v60 = vand.u32 2147483647, %v467_v59  ;;  %v468_v13 = vmax.f32 %v467_v59, 0.0  ;;  %vm469_vm7 = vcmp.ne.f32.partialorder %v467_v59, %v467_v59 }
 0x779   :  { %v472_v61 = vsub.f32 0.0, %v471_v60 }
 0x77b   :  { %v473_v63 = vmul.f32 1.442695, %v472_v61 }
 0x77d   :  { %1596 = vpow2.f32 %v473_v63 }
 0x77f   :  { %v1595_v58 = vpop.eup %1594 }
 0x780   :  { %504 = vrot.lane.b32.xlu1 %v1595_v58, %s1770_s6 }
 0x787   :  { %v1597_v2 = vpop.eup %1596 }
 0x788   :  { %v475_v3 = vadd.f32 1.0, %v1597_v2  ;;  %v478_v4 = vmul.f32 -0.5, %v1597_v2  ;;  %v481_v9 = vand.u32 2147483647, %v1597_v2 }
 0x78a   :  { %1598 = vlog2.f32 %v475_v3  ;;  %v479_v7 = vadd.f32 1.0, %v478_v4  ;;  %vm482_vm6 = vcmp.lt.f32.partialorder %v481_v9, 0.0004427343 }
 0x78c   :  { %v480_v11 = vmul.f32 %v1597_v2, %v479_v7 }
 0x794   :  { %v1599_v6 = vpop.eup %1598 }
 0x795   :  { %v477_v10 = vmul.f32 0.6931472, %v1599_v6 }
 0x797   :  { %v483_v12 = vsel %vm482_vm6, %v480_v11, %v477_v10 }
 0x798   :  { %v484_v14 = vadd.f32 %v483_v12, %v468_v13 }
 0x79a   :  { %v485_v15 = vsel %vm469_vm7, %v467_v59, %v484_v14 }
 0x79b   :  { %v486_v16 = vsub.f32 0.0, %v485_v15 }
 0x79d   :  { %v489_v17 = vadd.f32 %v486_v16, %v1883_v27  ;;  %v487_v26 = vmul.f32 1.442695, %v486_v16 }
 0x7e7   :  { %v492_v18 = vpop.permute.xlu1 %491 }
 0x7e8   :  { %v1912_v19 = vmax.f32 %v489_v17, %v492_v18 }
 0x7ea   :  { %496 = vrot.lane.b32.xlu0 %v1912_v19, %s1771_s7 }
 0x7f2   :  { %v505_v24 = vpop.permute.xlu1 %504 }
 0x85c   :  { %v497_v20 = vpop.permute.xlu0 %496 }
 0x85d   :  { %v499_v21 = vsub.f32 %v459_v56, %v497_v20 }
 0x85f   :  { %v500_v22 = vmul.f32 1.442695, %v499_v21 }
 0x861   :  { %1600 = vpow2.f32 %v500_v22 }
 0x862   :  { %1602 = vpow2.f32 %v487_v26 }
 0x86b   :  { %v1601_v23 = vpop.eup %1600 }
 0x86c   :  { %515 = vrot.lane.b32.xlu0 %v1601_v23, %s1770_s6  ;;  %v507_v25 = vmul.f32 %v1601_v23, %v505_v24  ;;  %v1603_v28 = vpop.eup %1602 }
 0x86d   :  { %v513_v29 = vmul.f32 %v1603_v28, %v1890_v39  ;;  %v502_v33 = vmul.f32 %v1603_v28, %v1894_v42 }
 0x86e   :  { %509 = vrot.lane.b32.xlu1 %v507_v25, %s1770_s6 }
 0x8de   :  { %v516_v30 = vpop.permute.xlu0 %515 }
 0x8df   :  { %v1919_v31 = vadd.f32 %v516_v30, %v513_v29 }
 0x8e0   :  { %v510_v32 = vpop.permute.xlu1 %509 }
 0x8e1   :  { %1604 = vrcp.f32 %v1919_v31  ;;  %v1923_v34 = vadd.f32 %v510_v32, %v502_v33 }
 0x8e2   :  { %1606 = vpow2.f32 %v1364_v38 }
 0x8eb   :  { %v1605_v35 = vpop.eup %1604 }
 0x8ec   :  { %v520_v37 = vmul.f32 %v1605_v35, %v1923_v34  ;;  %v1607_v40 = vpop.eup %1606 }
 0x8ed   :  { %v464_v41 = vadd.f32 1.0, %v1607_v40 }
 0x8ee   :  { %522 = vrot.lane.b32.xlu0 %v520_v37, %s1770_s6 }
 0x8ef   :  { %1608 = vrcp.f32 %v464_v41 }
 0x8f9   :  { %v1609_v43 = vpop.eup %1608 }
 0x960   :  { %v523_v44 = vpop.permute.xlu0 %522 }
 0x961   :  { %v525_v45 = vmul.f32 %v1609_v43, %v523_v44 }
 0x963   :  { %527 = vrot.lane.b32.xlu1 %v525_v45, %s1770_s6 }
 0x9d5   :  { %v1928_v46 = vpop.permute.xlu1 %527 }
 0x9d6   :  { %1457 = vmatmul.mubr.msk.f32.vlgmr.msra.gmra.mrb[2].mxu1 %vm44_vm0, %v1928_v46 }
 0x9d7   :  { %1535 = vmatpush3.bf16.msra.mxu1 %v1832_v5  ;;  %1478 = vmatprep.mubr.msk.f32.mxu1 %vm1767_vm1, %v1768_v1 }
 0x9d8   :  { %1536 = vmatprep.subr.bf16.mxu1 %v1766_v0 }
 0x9db   :  { %1538 = vmatpush3.bf16.msra.mxu1 %v1836_v8 }
 0x9dc   :  { %1545 = vmatprep.subr.bf16.mxu1 %v1766_v0 }
 0xaa9   :  { %v612_v48 = vpop.f32.mrb[2].mxu1 }
 0xaaa   :  { %v616_v50 = vadd.f32 %v612_v48, %v543_v47  ;;  %v1458_v51 = vpop.f32.mrb[3].mxu1  ;;  %v700_v47 = vld [vmem:[#allocation6 + $0x20] sm:$0xff] }
 0xaac   :  { %1610 = vtanh.f32 %v616_v50  ;;  %648 = vrot.lane.b32.xlu0 %v616_v50, %s1770_s6  ;;  %v624_v55 = vsub.f32 0.0, %v616_v50  ;;  %v1366_v37 = vmul.f32 -1.442695, %v616_v50 }
 0xaae   :  { %v628_v56 = vand.u32 2147483647, %v624_v55  ;;  %v625_v9 = vmax.f32 %v624_v55, 0.0  ;;  %vm626_vm9 = vcmp.ne.f32.partialorder %v624_v55, %v624_v55 }
 0xab0   :  { %v629_v57 = vsub.f32 0.0, %v628_v56 }
 0xab2   :  { %v630_v58 = vmul.f32 1.442695, %v629_v57 }
 0xab4   :  { %1612 = vpow2.f32 %v630_v58 }
 0xab6   :  { %v1611_v54 = vpop.eup %1610 }
 0xab7   :  { %661 = vrot.lane.b32.xlu0 %v1611_v54, %s1770_s6 }
 0xabe   :  { %v1613_v59 = vpop.eup %1612 }
 0xabf   :  { %v632_v60 = vadd.f32 1.0, %v1613_v59  ;;  %v635_v61 = vmul.f32 -0.5, %v1613_v59  ;;  %v638_v3 = vand.u32 2147483647, %v1613_v59 }
 0xac1   :  { %1614 = vlog2.f32 %v632_v60  ;;  %v636_v2 = vadd.f32 1.0, %v635_v61  ;;  %vm639_vm8 = vcmp.lt.f32.partialorder %v638_v3, 0.0004427343 }
 0xac3   :  { %v637_v6 = vmul.f32 %v1613_v59, %v636_v2 }
 0xacb   :  { %v1615_v63 = vpop.eup %1614 }
 0xacc   :  { %v634_v4 = vmul.f32 0.6931472, %v1615_v63 }
 0xace   :  { %v640_v7 = vsel %vm639_vm8, %v637_v6, %v634_v4 }
 0xacf   :  { %v641_v10 = vadd.f32 %v640_v7, %v625_v9 }
 0xad1   :  { %v642_v11 = vsel %vm626_vm9, %v624_v55, %v641_v10 }
 0xad2   :  { %v643_v12 = vsub.f32 0.0, %v642_v11 }
 0xad4   :  { %v646_v13 = vadd.f32 %v643_v12, %v1912_v19  ;;  %v644_v23 = vmul.f32 1.442695, %v643_v12 }
 0xb1e   :  { %v649_v14 = vpop.permute.xlu0 %648 }
 0xb1f   :  { %v1941_v15 = vmax.f32 %v646_v13, %v649_v14 }
 0xb21   :  { %653 = vrot.lane.b32.xlu1 %v1941_v15, %s1771_s7 }
 0xb29   :  { %v662_v21 = vpop.permute.xlu0 %661 }
 0xb93   :  { %v654_v16 = vpop.permute.xlu1 %653 }
 0xb94   :  { %v656_v17 = vsub.f32 %v616_v50, %v654_v16 }
 0xb96   :  { %v657_v18 = vmul.f32 1.442695, %v656_v17 }
 0xb98   :  { %1616 = vpow2.f32 %v657_v18 }
 0xb99   :  { %1618 = vpow2.f32 %v644_v23 }
 0xba2   :  { %v1617_v20 = vpop.eup %1616 }
 0xba3   :  { %672 = vrot.lane.b32.xlu1 %v1617_v20, %s1770_s6  ;;  %v664_v22 = vmul.f32 %v1617_v20, %v662_v21  ;;  %v1619_v24 = vpop.eup %1618 }
 0xba4   :  { %v670_v25 = vmul.f32 %v1619_v24, %v1919_v31  ;;  %v659_v30 = vmul.f32 %v1619_v24, %v1923_v34 }
 0xba5   :  { %666 = vrot.lane.b32.xlu0 %v664_v22, %s1770_s6 }
 0xc15   :  { %v673_v26 = vpop.permute.xlu1 %672 }
 0xc16   :  { %v1948_v28 = vadd.f32 %v673_v26, %v670_v25 }
 0xc17   :  { %v667_v29 = vpop.permute.xlu0 %666 }
 0xc18   :  { %1620 = vrcp.f32 %v1948_v28  ;;  %v1952_v32 = vadd.f32 %v667_v29, %v659_v30 }
 0xc19   :  { %1622 = vpow2.f32 %v1366_v37 }
 0xc22   :  { %v1621_v33 = vpop.eup %1620 }
 0xc23   :  { %v677_v35 = vmul.f32 %v1621_v33, %v1952_v32  ;;  %v1623_v38 = vpop.eup %1622 }
 0xc24   :  { %v621_v40 = vadd.f32 1.0, %v1623_v38 }
 0xc25   :  { %679 = vrot.lane.b32.xlu1 %v677_v35, %s1770_s6 }
 0xc26   :  { %1624 = vrcp.f32 %v621_v40 }
 0xc30   :  { %v1625_v41 = vpop.eup %1624 }
 0xc97   :  { %v680_v43 = vpop.permute.xlu1 %679 }
 0xc98   :  { %v682_v44 = vmul.f32 %v1625_v41, %v680_v43 }
 0xc9a   :  { %684 = vrot.lane.b32.xlu0 %v682_v44, %s1770_s6 }
 0xd0c   :  { %v1957_v45 = vpop.permute.xlu0 %684 }
 0xd0d   :  { %1468 = vmatmul.mubr.msk.f32.vlgmr.msra.gmra.mrb[4].mxu0 %vm44_vm0, %v1957_v45 }
 0xd0e   :  { %1541 = vmatpush3.bf16.msra.mxu0 %v1832_v5  ;;  %1489 = vmatprep.mubr.msk.f32.mxu0 %vm1767_vm1, %v1768_v1 }
 0xd0f   :  { %1542 = vmatprep.subr.bf16.mxu0 %v1766_v0 }
 0xd12   :  { %1544 = vmatpush3.bf16.msra.mxu0 %v1836_v8 }
 0xde0   :  { %v769_v48 = vpop.f32.mrb[4].mxu0 }
 0xde1   :  { %v773_v50 = vadd.f32 %v769_v48, %v700_v47  ;;  %v1469_v51 = vpop.f32.mrb[5].mxu0 }
 0xde3   :  { %1626 = vtanh.f32 %v773_v50  ;;  %805 = vrot.lane.b32.xlu1 %v773_v50, %s1770_s6  ;;  %v781_v55 = vsub.f32 0.0, %v773_v50  ;;  %v1368_v41 = vmul.f32 -1.442695, %v773_v50 }
 0xde5   :  { %v785_v56 = vand.u32 2147483647, %v781_v55  ;;  %v782_v9 = vmax.f32 %v781_v55, 0.0  ;;  %vm783_vm11 = vcmp.ne.f32.partialorder %v781_v55, %v781_v55 }
 0xde7   :  { %v786_v57 = vsub.f32 0.0, %v785_v56 }
 0xde9   :  { %v787_v58 = vmul.f32 1.442695, %v786_v57 }
 0xdeb   :  { %1628 = vpow2.f32 %v787_v58 }
 0xded   :  { %v1627_v54 = vpop.eup %1626 }
 0xdee   :  { %818 = vrot.lane.b32.xlu1 %v1627_v54, %s1770_s6 }
 0xdf5   :  { %v1629_v59 = vpop.eup %1628 }
 0xdf6   :  { %v789_v60 = vadd.f32 1.0, %v1629_v59  ;;  %v792_v61 = vmul.f32 -0.5, %v1629_v59  ;;  %v795_v3 = vand.u32 2147483647, %v1629_v59 }
 0xdf8   :  { %1630 = vlog2.f32 %v789_v60  ;;  %v793_v2 = vadd.f32 1.0, %v792_v61  ;;  %vm796_vm10 = vcmp.lt.f32.partialorder %v795_v3, 0.0004427343 }
 0xdfa   :  { %v794_v6 = vmul.f32 %v1629_v59, %v793_v2 }
 0xe02   :  { %v1631_v63 = vpop.eup %1630 }
 0xe03   :  { %v791_v4 = vmul.f32 0.6931472, %v1631_v63 }
 0xe05   :  { %v797_v7 = vsel %vm796_vm10, %v794_v6, %v791_v4 }
 0xe06   :  { %v798_v10 = vadd.f32 %v797_v7, %v782_v9 }
 0xe08   :  { %v799_v11 = vsel %vm783_vm11, %v781_v55, %v798_v10 }
 0xe09   :  { %v800_v12 = vsub.f32 0.0, %v799_v11 }
 0xe0b   :  { %v803_v13 = vadd.f32 %v800_v12, %v1941_v15  ;;  %v801_v24 = vmul.f32 1.442695, %v800_v12 }
 0xe55   :  { %v806_v14 = vpop.permute.xlu1 %805 }
 0xe56   :  { %v1969_v16 = vmax.f32 %v803_v13, %v806_v14 }
 0xe58   :  { %810 = vrot.lane.b32.xlu0 %v1969_v16, %s1771_s7 }
 0xe60   :  { %v819_v22 = vpop.permute.xlu1 %818 }
 0xeca   :  { %v811_v17 = vpop.permute.xlu0 %810 }
 0xecb   :  { %v813_v18 = vsub.f32 %v773_v50, %v811_v17  ;;  %v857_v50 = vld [vmem:[#allocation6 + $0x28] sm:$0xff] }
 0xecd   :  { %v814_v20 = vmul.f32 1.442695, %v813_v18 }
 0xecf   :  { %1632 = vpow2.f32 %v814_v20 }
 0xed0   :  { %1634 = vpow2.f32 %v801_v24 }
 0xed9   :  { %v1633_v21 = vpop.eup %1632 }
 0xeda   :  { %829 = vrot.lane.b32.xlu0 %v1633_v21, %s1770_s6  ;;  %v821_v23 = vmul.f32 %v1633_v21, %v819_v22  ;;  %v1635_v25 = vpop.eup %1634 }
 0xedb   :  { %v827_v26 = vmul.f32 %v1635_v25, %v1948_v28  ;;  %v816_v35 = vmul.f32 %v1635_v25, %v1952_v32 }
 0xedc   :  { %823 = vrot.lane.b32.xlu1 %v821_v23, %s1770_s6 }
 0xf4c   :  { %v830_v29 = vpop.permute.xlu0 %829 }
 0xf4d   :  { %v1976_v30 = vadd.f32 %v830_v29, %v827_v26 }
 0xf4e   :  { %v824_v33 = vpop.permute.xlu1 %823 }
 0xf4f   :  { %1636 = vrcp.f32 %v1976_v30  ;;  %v1980_v37 = vadd.f32 %v824_v33, %v816_v35 }
 0xf50   :  { %1638 = vpow2.f32 %v1368_v41 }
 0xf59   :  { %v1637_v38 = vpop.eup %1636 }
 0xf5a   :  { %v834_v40 = vmul.f32 %v1637_v38, %v1980_v37  ;;  %v1639_v43 = vpop.eup %1638 }
 0xf5b   :  { %v778_v44 = vadd.f32 1.0, %v1639_v43 }
 0xf5c   :  { %836 = vrot.lane.b32.xlu0 %v834_v40, %s1770_s6 }
 0xf5d   :  { %1640 = vrcp.f32 %v778_v44 }
 0xf67   :  { %v1641_v47 = vpop.eup %1640 }
 0xfce   :  { %v837_v48 = vpop.permute.xlu0 %836 }
 0xfcf   :  { %v839_v51 = vmul.f32 %v1641_v47, %v837_v48 }
 0xfd1   :  { %841 = vrot.lane.b32.xlu1 %v839_v51, %s1770_s6 }
0x1043   :  { %v1985_v54 = vpop.permute.xlu1 %841 }
0x1044   :  { %1479 = vmatmul.mubr.msk.f32.vlgmr.msra.gmra.mrb[4].mxu1 %vm44_vm0, %v1985_v54 }
0x1045   :  { %1547 = vmatpush3.bf16.msra.mxu1 %v1832_v5  ;;  %1500 = vmatprep.mubr.msk.f32.mxu1 %vm1767_vm1, %v1768_v1 }
0x1046   :  { %1548 = vmatprep.subr.bf16.mxu1 %v1766_v0 }
0x1049   :  { %1550 = vmatpush3.bf16.msra.mxu1 %v1836_v8 }
0x1117   :  { %v926_v55 = vpop.f32.mrb[4].mxu1 }
0x1118   :  { %v930_v56 = vadd.f32 %v926_v55, %v857_v50  ;;  %v1480_v57 = vpop.f32.mrb[5].mxu1 }
0x111a   :  { %1642 = vtanh.f32 %v930_v56  ;;  %962 = vrot.lane.b32.xlu0 %v930_v56, %s1770_s6  ;;  %v938_v59 = vsub.f32 0.0, %v930_v56  ;;  %v1370_v47 = vmul.f32 -1.442695, %v930_v56 }
0x111c   :  { %v942_v60 = vand.u32 2147483647, %v938_v59  ;;  %v939_v9 = vmax.f32 %v938_v59, 0.0  ;;  %vm940_vm13 = vcmp.ne.f32.partialorder %v938_v59, %v938_v59 }
0x111e   :  { %v943_v5 = vsub.f32 0.0, %v942_v60 }
0x1120   :  { %v944_v61 = vmul.f32 1.442695, %v943_v5 }
0x1122   :  { %1644 = vpow2.f32 %v944_v61 }
0x1124   :  { %v1643_v58 = vpop.eup %1642 }
0x1125   :  { %975 = vrot.lane.b32.xlu0 %v1643_v58, %s1770_s6 }
0x112c   :  { %v1645_v1 = vpop.eup %1644 }
0x112d   :  { %v946_v63 = vadd.f32 1.0, %v1645_v1  ;;  %v949_v0 = vmul.f32 -0.5, %v1645_v1  ;;  %v952_v3 = vand.u32 2147483647, %v1645_v1 }
0x112f   :  { %1646 = vlog2.f32 %v946_v63  ;;  %v950_v2 = vadd.f32 1.0, %v949_v0  ;;  %vm953_vm12 = vcmp.lt.f32.partialorder %v952_v3, 0.0004427343 }
0x1131   :  { %v951_v6 = vmul.f32 %v1645_v1, %v950_v2 }
0x1139   :  { %v1647_v8 = vpop.eup %1646 }
0x113a   :  { %v948_v4 = vmul.f32 0.6931472, %v1647_v8 }
0x113c   :  { %v954_v7 = vsel %vm953_vm12, %v951_v6, %v948_v4 }
0x113d   :  { %v955_v10 = vadd.f32 %v954_v7, %v939_v9 }
0x113f   :  { %v956_v11 = vsel %vm940_vm13, %v938_v59, %v955_v10  ;;  %v1014_v59 = vld [vmem:[#allocation6 + $0x30] sm:$0xff] }
0x1140   :  { %v957_v12 = vsub.f32 0.0, %v956_v11 }
0x1142   :  { %v960_v13 = vadd.f32 %v957_v12, %v1969_v16  ;;  %v958_v25 = vmul.f32 1.442695, %v957_v12 }
0x118c   :  { %v963_v14 = vpop.permute.xlu0 %962 }
0x118d   :  { %v1997_v17 = vmax.f32 %v960_v13, %v963_v14 }
0x118f   :  { %967 = vrot.lane.b32.xlu1 %v1997_v17, %s1771_s7 }
0x1197   :  { %v976_v23 = vpop.permute.xlu0 %975 }
0x1201   :  { %v968_v18 = vpop.permute.xlu1 %967 }
0x1202   :  { %v970_v20 = vsub.f32 %v930_v56, %v968_v18 }
0x1204   :  { %v971_v21 = vmul.f32 1.442695, %v970_v20 }
0x1206   :  { %1648 = vpow2.f32 %v971_v21 }
0x1207   :  { %1650 = vpow2.f32 %v958_v25 }
0x1210   :  { %v1649_v22 = vpop.eup %1648 }
0x1211   :  { %986 = vrot.lane.b32.xlu1 %v1649_v22, %s1770_s6  ;;  %v978_v24 = vmul.f32 %v1649_v22, %v976_v23  ;;  %v1651_v26 = vpop.eup %1650 }
0x1212   :  { %v984_v29 = vmul.f32 %v1651_v26, %v1976_v30  ;;  %v973_v40 = vmul.f32 %v1651_v26, %v1980_v37 }
0x1213   :  { %980 = vrot.lane.b32.xlu0 %v978_v24, %s1770_s6 }
0x1283   :  { %v987_v33 = vpop.permute.xlu1 %986 }
0x1284   :  { %v2004_v35 = vadd.f32 %v987_v33, %v984_v29 }
0x1285   :  { %v981_v38 = vpop.permute.xlu0 %980 }
0x1286   :  { %1652 = vrcp.f32 %v2004_v35  ;;  %v2008_v41 = vadd.f32 %v981_v38, %v973_v40 }
0x1287   :  { %1654 = vpow2.f32 %v1370_v47 }
0x1290   :  { %v1653_v43 = vpop.eup %1652 }
0x1291   :  { %v991_v44 = vmul.f32 %v1653_v43, %v2008_v41  ;;  %v1655_v48 = vpop.eup %1654 }
0x1292   :  { %v935_v51 = vadd.f32 1.0, %v1655_v48 }
0x1293   :  { %993 = vrot.lane.b32.xlu1 %v991_v44, %s1770_s6 }
0x1294   :  { %1656 = vrcp.f32 %v935_v51 }
0x129e   :  { %v1657_v50 = vpop.eup %1656 }
0x1305   :  { %v994_v55 = vpop.permute.xlu1 %993 }
0x1306   :  { %v996_v57 = vmul.f32 %v1657_v50, %v994_v55 }
0x1308   :  { %998 = vrot.lane.b32.xlu0 %v996_v57, %s1770_s6 }
0x137a   :  { %v2013_v58 = vpop.permute.xlu0 %998 }
0x137b   :  { %1490 = vmatmul.mubr.msk.f32.vlgmr.msra.gmra.mrb[6].mxu0 %vm44_vm0, %v2013_v58 }
0x144e   :  { %v1083_v60 = vpop.f32.mrb[6].mxu0 }
0x144f   :  { %v1087_v5 = vadd.f32 %v1083_v60, %v1014_v59  ;;  %v1491_v61 = vpop.f32.mrb[7].mxu0 }
0x1451   :  { %1658 = vtanh.f32 %v1087_v5  ;;  %1119 = vrot.lane.b32.xlu1 %v1087_v5, %s1770_s6  ;;  %v1095_v1 = vsub.f32 0.0, %v1087_v5  ;;  %v1372_v60 = vmul.f32 -1.442695, %v1087_v5 }
0x1453   :  { %v1099_v63 = vand.u32 2147483647, %v1095_v1  ;;  %v1096_v13 = vmax.f32 %v1095_v1, 0.0  ;;  %vm1097_vm15 = vcmp.ne.f32.partialorder %v1095_v1, %v1095_v1 }
0x1455   :  { %v1100_v0 = vsub.f32 0.0, %v1099_v63 }
0x1457   :  { %v1101_v8 = vmul.f32 1.442695, %v1100_v0 }
0x1459   :  { %1660 = vpow2.f32 %v1101_v8 }
0x145b   :  { %v1659_v56 = vpop.eup %1658 }
0x145c   :  { %1132 = vrot.lane.b32.xlu1 %v1659_v56, %s1770_s6 }
0x1463   :  { %v1661_v2 = vpop.eup %1660 }
0x1464   :  { %v1103_v3 = vadd.f32 1.0, %v1661_v2  ;;  %v1106_v4 = vmul.f32 -0.5, %v1661_v2  ;;  %v1109_v9 = vand.u32 2147483647, %v1661_v2 }
0x1466   :  { %1662 = vlog2.f32 %v1103_v3  ;;  %v1107_v7 = vadd.f32 1.0, %v1106_v4  ;;  %vm1110_vm14 = vcmp.lt.f32.partialorder %v1109_v9, 0.0004427343 }
0x1468   :  { %v1108_v11 = vmul.f32 %v1661_v2, %v1107_v7  ;;  %v1171_v2 = vld [vmem:[#allocation6 + $0x38] sm:$0xff] }
0x1470   :  { %v1663_v6 = vpop.eup %1662 }
0x1471   :  { %v1105_v10 = vmul.f32 0.6931472, %v1663_v6 }
0x1473   :  { %v1111_v12 = vsel %vm1110_vm14, %v1108_v11, %v1105_v10 }
0x1474   :  { %v1112_v14 = vadd.f32 %v1111_v12, %v1096_v13 }
0x1476   :  { %v1113_v18 = vsel %vm1097_vm15, %v1095_v1, %v1112_v14 }
0x1477   :  { %v1114_v20 = vsub.f32 0.0, %v1113_v18 }
0x1479   :  { %v1117_v21 = vadd.f32 %v1114_v20, %v1997_v17  ;;  %v1115_v40 = vmul.f32 1.442695, %v1114_v20 }
0x14c3   :  { %v1120_v22 = vpop.permute.xlu1 %1119 }
0x14c4   :  { %v2020_v23 = vmax.f32 %v1117_v21, %v1120_v22 }
0x14c6   :  { %1124 = vrot.lane.b32.xlu0 %v2020_v23, %s1771_s7 }
0x14ce   :  { %v1133_v33 = vpop.permute.xlu1 %1132 }
0x1538   :  { %v1125_v24 = vpop.permute.xlu0 %1124 }
0x1539   :  { %v1127_v25 = vsub.f32 %v1087_v5, %v1125_v24 }
0x153b   :  { %v1128_v26 = vmul.f32 1.442695, %v1127_v25 }
0x153d   :  { %1664 = vpow2.f32 %v1128_v26 }
0x153e   :  { %1666 = vpow2.f32 %v1115_v40 }
0x1547   :  { %v1665_v29 = vpop.eup %1664 }
0x1548   :  { %1143 = vrot.lane.b32.xlu0 %v1665_v29, %s1770_s6  ;;  %v1135_v38 = vmul.f32 %v1665_v29, %v1133_v33  ;;  %v1667_v43 = vpop.eup %1666 }
0x1549   :  { %v1141_v44 = vmul.f32 %v1667_v43, %v2004_v35  ;;  %v1130_v50 = vmul.f32 %v1667_v43, %v2008_v41 }
0x154a   :  { %1137 = vrot.lane.b32.xlu1 %v1135_v38, %s1770_s6 }
0x15ba   :  { %v1144_v47 = vpop.permute.xlu0 %1143 }
0x15bb   :  { %v2027_v48 = vadd.f32 %v1144_v47, %v1141_v44 }
0x15bc   :  { %v1138_v51 = vpop.permute.xlu1 %1137 }
0x15bd   :  { %1668 = vrcp.f32 %v2027_v48  ;;  %v2031_v55 = vadd.f32 %v1138_v51, %v1130_v50 }
0x15be   :  { %1670 = vpow2.f32 %v1372_v60 }
0x15c7   :  { %v1669_v57 = vpop.eup %1668 }
0x15c8   :  { %v1148_v59 = vmul.f32 %v1669_v57, %v2031_v55  ;;  %v1671_v61 = vpop.eup %1670 }
0x15c9   :  { %v1092_v56 = vadd.f32 1.0, %v1671_v61 }
0x15ca   :  { %1150 = vrot.lane.b32.xlu0 %v1148_v59, %s1770_s6 }
0x15cb   :  { %1672 = vrcp.f32 %v1092_v56 }
0x15d5   :  { %v1673_v1 = vpop.eup %1672 }
0x163c   :  { %v1151_v63 = vpop.permute.xlu0 %1150 }
0x163d   :  { %v1153_v0 = vmul.f32 %v1673_v1, %v1151_v63 }
0x163f   :  { %1155 = vrot.lane.b32.xlu1 %v1153_v0, %s1770_s6 }
0x16b1   :  { %v2036_v8 = vpop.permute.xlu1 %1155 }
0x16b2   :  { %1501 = vmatmul.mubr.msk.f32.vlgmr.msra.gmra.mrb[6].mxu1 %vm44_vm0, %v2036_v8 }
0x1785   :  { %v1240_v3 = vpop.f32.mrb[6].mxu1 }
0x1786   :  { %v2040_v4 = vadd.f32 %v1240_v3, %v1171_v2  ;;  %v1502_v6 = vpop.f32.mrb[7].mxu1 }
0x1788   :  { %1674 = vtanh.f32 %v2040_v4  ;;  %1276 = vrot.lane.b32.xlu0 %v2040_v4, %s1770_s6  ;;  %v1252_v7 = vsub.f32 0.0, %v2040_v4 }
0x178a   :  { %v1256_v9 = vand.u32 2147483647, %v1252_v7  ;;  %v1253_v26 = vmax.f32 %v1252_v7, 0.0  ;;  %vm1254_vm2 = vcmp.ne.f32.partialorder %v1252_v7, %v1252_v7 }
0x178c   :  { %v1257_v10 = vsub.f32 0.0, %v1256_v9 }
0x178e   :  { %v1258_v11 = vmul.f32 1.442695, %v1257_v10 }
0x1790   :  { %1676 = vpow2.f32 %v1258_v11 }
0x1792   :  { %v1675_v5 = vpop.eup %1674 }
0x1793   :  { %1289 = vrot.lane.b32.xlu0 %v1675_v5, %s1770_s6 }
0x179a   :  { %v1677_v12 = vpop.eup %1676 }
0x179b   :  { %v1260_v13 = vadd.f32 1.0, %v1677_v12  ;;  %v1263_v14 = vmul.f32 -0.5, %v1677_v12  ;;  %v1266_v21 = vand.u32 2147483647, %v1677_v12 }
0x179d   :  { %1678 = vlog2.f32 %v1260_v13  ;;  %v1264_v20 = vadd.f32 1.0, %v1263_v14  ;;  %vm1267_vm1 = vcmp.lt.f32.partialorder %v1266_v21, 0.0004427343 }
0x179f   :  { %v1265_v24 = vmul.f32 %v1677_v12, %v1264_v20 }
0x17a7   :  { %v1679_v18 = vpop.eup %1678 }
0x17a8   :  { %v1262_v22 = vmul.f32 0.6931472, %v1679_v18 }
0x17aa   :  { %v1268_v25 = vsel %vm1267_vm1, %v1265_v24, %v1262_v22 }
0x17ab   :  { %v1269_v29 = vadd.f32 %v1268_v25, %v1253_v26 }
0x17ad   :  { %v1270_v33 = vsel %vm1254_vm2, %v1252_v7, %v1269_v29 }
0x17ae   :  { %v1271_v38 = vsub.f32 0.0, %v1270_v33 }
0x17b0   :  { %v1274_v40 = vadd.f32 %v1271_v38, %v2020_v23  ;;  %v1272_v61 = vmul.f32 1.442695, %v1271_v38 }
0x17fa   :  { %v1277_v43 = vpop.permute.xlu0 %1276 }
0x17fb   :  { %v2048_v44 = vmax.f32 %v1274_v40, %v1277_v43 }
0x17fd   :  { %1281 = vrot.lane.b32.xlu1 %v2048_v44, %s1771_s7 }
0x1805   :  { %v1290_v59 = vpop.permute.xlu0 %1289 }
0x186f   :  { %v1282_v47 = vpop.permute.xlu1 %1281 }
0x1870   :  { %v1284_v51 = vsub.f32 %v2040_v4, %v1282_v47 }
0x1872   :  { %v1285_v50 = vmul.f32 1.442695, %v1284_v51 }
0x1874   :  { %1680 = vpow2.f32 %v1285_v50 }
0x1875   :  { %1682 = vpow2.f32 %v1272_v61 }
0x187e   :  { %v1681_v57 = vpop.eup %1680 }
0x187f   :  { %1300 = vrot.lane.b32.xlu1 %v1681_v57, %s1770_s6  ;;  %v1292_v60 = vmul.f32 %v1681_v57, %v1290_v59  ;;  %v1683_v56 = vpop.eup %1682 }
0x1880   :  { %v1298_v1 = vmul.f32 %v1683_v56, %v2027_v48  ;;  %v1287_v2 = vmul.f32 %v1683_v56, %v2031_v55 }
0x1881   :  { %1294 = vrot.lane.b32.xlu0 %v1292_v60, %s1770_s6 }
0x1885   :  { %216 = vrot.lane.b32.xlu0 %v1865_v53, %s1771_s7 }
0x1889   :  { %531 = vrot.lane.b32.xlu0 %v1923_v34, %s1771_s7 }
0x188d   :  { %845 = vrot.lane.b32.xlu0 %v1980_v37, %s1771_s7 }
0x1891   :  { %1159 = vrot.lane.b32.xlu0 %v2031_v55, %s1771_s7 }
0x18f1   :  { %v1301_v63 = vpop.permute.xlu1 %1300 }
0x18f2   :  { %v2064_v0 = vadd.f32 %v1301_v63, %v1298_v1 }
0x18f3   :  { %v1295_v53 = vpop.permute.xlu0 %1294 }
0x18f4   :  { %1684 = vrcp.f32 %v2064_v0  ;;  %v1297_v34 = vadd.f32 %v1295_v53, %v1287_v2 }
0x18f6   :  { %1316 = vrot.lane.b32.xlu0 %v1297_v34, %s1771_s7 }
0x18fa   :  { %377 = vrot.lane.b32.xlu0 %v1883_v27, %s1770_s6  ;;  %v217_v27 = vpop.permute.xlu0 %216 }
0x18fb   :  { %v222_v21 = vsel %vm44_vm0, %v1870_v62, %v217_v27 }
0x18fe   :  { %v1685_v37 = vpop.eup %1684  ;;  %691 = vrot.lane.b32.xlu0 %v1941_v15, %s1770_s6  ;;  %v532_v15 = vpop.permute.xlu0 %531 }
0x18ff   :  { %v1305_v3 = vmul.f32 %v1685_v37, %v1297_v34  ;;  %v537_v26 = vsel %vm44_vm0, %v1928_v46, %v532_v15 }
0x1901   :  { %1307 = vrot.lane.b32.xlu1 %v1305_v3, %s1770_s6 }
0x1902   :  { %1005 = vrot.lane.b32.xlu0 %v1997_v17, %s1770_s6 }
0x1905   :  { %374 = vrot.lane.b32.xlu1 %v1894_v42, %s1771_s7  ;;  %v1374_v42 = vmul.f32 -1.442695, %v2040_v4 }
0x1906   :  { %1319 = vrot.lane.b32.xlu0 %v2048_v44, %s1770_s6 }
0x1907   :  { %1686 = vpow2.f32 %v1374_v42 }
0x1909   :  { %688 = vrot.lane.b32.xlu1 %v1952_v32, %s1771_s7  ;;  %v846_v32 = vpop.permute.xlu0 %845 }
0x190a   :  { %1333 = vrot.lane.b32.xlu0 %v2064_v0, %s1769_s1 }
0x190d   :  { %1002 = vrot.lane.b32.xlu1 %v2008_v41, %s1771_s7  ;;  %v1160_v41 = vpop.permute.xlu0 %1159 }
0x190e   :  { %v1165_v46 = vsel %vm44_vm0, %v2036_v8, %v1160_v41 }
0x1911   :  { %219 = vrot.lane.b32.xlu1 %v1855_v36, %s1770_s6  ;;  %v1687_v17 = vpop.eup %1686 }
0x1912   :  { %v1249_v36 = vadd.f32 1.0, %v1687_v17 }
0x1914   :  { %1688 = vrcp.f32 %v1249_v36 }
0x1915   :  { %534 = vrot.lane.b32.xlu1 %v1912_v19, %s1770_s6 }
0x1919   :  { %848 = vrot.lane.b32.xlu1 %v1969_v16, %s1770_s6 }
0x191d   :  { %1162 = vrot.lane.b32.xlu1 %v2020_v23, %s1770_s6 }
0x191e   :  { %v1689_v5 = vpop.eup %1688 }
0x1921   :  { %1328 = vrot.lane.b32.xlu1 %v1297_v34, %s1769_s1 }
0x1968   :  { %v1317_v55 = vpop.permute.xlu0 %1316 }
0x196c   :  { %v378_v19 = vpop.permute.xlu0 %377 }
0x1970   :  { %v692_v6 = vpop.permute.xlu0 %691 }
0x1973   :  { %v1308_v16 = vpop.permute.xlu1 %1307 }
0x1974   :  { %v1310_v7 = vmul.f32 %v1689_v5, %v1308_v16  ;;  %v1006_v9 = vpop.permute.xlu0 %1005 }
0x1976   :  { %1312 = vrot.lane.b32.xlu1 %v1310_v7, %s1770_s6 }
0x1977   :  { %v375_v23 = vpop.permute.xlu1 %374 }
0x1978   :  { %v380_v4 = vsel %vm44_vm0, %v1899_v52, %v375_v23  ;;  %v1320_v10 = vpop.permute.xlu0 %1319 }
0x1979   :  { %v381_v11 = vsel %vm223_vm4, %v380_v4, %v1890_v39 }
0x197a   :  { %v382_v12 = vsel %vm225_vm3, %v381_v11, %v378_v19  ;;  %1337 = vrot.lane.b32.xlu1 %v2048_v44, %s1769_s1 }
0x197b   :  { %384 = vst [vmem:[#allocation11 + $0x8] sm:$0xff] %v382_v12  ;;  %v689_v13 = vpop.permute.xlu1 %688 }
0x197c   :  { %v694_v14 = vsel %vm44_vm0, %v1957_v45, %v689_v13  ;;  %v1334_v18 = vpop.permute.xlu0 %1333 }
0x197d   :  { %v695_v20 = vsel %vm223_vm4, %v694_v14, %v1948_v28  ;;  %1336 = vst.msk [vmem:[#allocation4] sm:$0xff] %vm44_vm0, %v1334_v18  ;;  %v224_v28 = vsel %vm223_vm4, %v222_v21, %v1862_v49 }
0x197e   :  { %v696_v52 = vsel %vm225_vm3, %v695_v20, %v692_v6 }
0x197f   :  { %698 = vst [vmem:[#allocation11 + $0x18] sm:$0xff] %v696_v52  ;;  %v1003_v39 = vpop.permute.xlu1 %1002 }
0x1980   :  { %v1008_v22 = vsel %vm44_vm0, %v2013_v58, %v1003_v39  ;;  %v538_v58 = vsel %vm223_vm4, %v537_v26, %v1919_v31  ;;  %v1166_v31 = vsel %vm223_vm4, %v1165_v46, %v2027_v48 }
0x1981   :  { %v1009_v24 = vsel %vm223_vm4, %v1008_v22, %v2004_v35  ;;  %v851_v35 = vsel %vm44_vm0, %v1985_v54, %v846_v32 }
0x1982   :  { %v1010_v45 = vsel %vm225_vm3, %v1009_v24, %v1006_v9  ;;  %v852_v49 = vsel %vm223_vm4, %v851_v35, %v1976_v30 }
0x1983   :  { %1012 = vst [vmem:[#allocation11 + $0x28] sm:$0xff] %v1010_v45  ;;  %v220_v25 = vpop.permute.xlu1 %219 }
0x1984   :  { %v226_v29 = vsel %vm225_vm3, %v224_v28, %v220_v25 }
0x1985   :  { %227 = vst [vmem:[#allocation11] sm:$0xff] %v226_v29 }
0x1987   :  { %v535_v62 = vpop.permute.xlu1 %534 }
0x1988   :  { %v539_v33 = vsel %vm225_vm3, %v538_v58, %v535_v62 }
0x1989   :  { %541 = vst [vmem:[#allocation11 + $0x10] sm:$0xff] %v539_v33 }
0x198b   :  { %v849_v38 = vpop.permute.xlu1 %848 }
0x198c   :  { %v853_v40 = vsel %vm225_vm3, %v852_v49, %v849_v38 }
0x198d   :  { %855 = vst [vmem:[#allocation11 + $0x20] sm:$0xff] %v853_v40 }
0x198f   :  { %v1163_v43 = vpop.permute.xlu1 %1162 }
0x1990   :  { %v1167_v44 = vsel %vm225_vm3, %v1166_v31, %v1163_v43 }
0x1991   :  { %1169 = vst [vmem:[#allocation11 + $0x30] sm:$0xff] %v1167_v44 }
0x1993   :  { %v1329_v54 = vpop.permute.xlu1 %1328 }
0x1994   :  { %1331 = vst.msk [vmem:[#allocation3] sm:$0xff] %vm44_vm0, %v1329_v54 }
0x19e8   :  { %v1313_v47 = vpop.permute.xlu1 %1312 }
0x19e9   :  { %v1322_v30 = vsel %vm44_vm0, %v1313_v47, %v1317_v55  ;;  %1327 = vst.msk [vmem:[#allocation2] sm:$0xff] %vm44_vm0, %v1313_v47 }
0x19ea   :  { %v1323_v8 = vsel %vm223_vm4, %v1322_v30, %v2064_v0 }
0x19eb   :  { %v1324_v51 = vsel %vm225_vm3, %v1323_v8, %v1320_v10 }
0x19ec   :  { %1326 = vst [vmem:[#allocation11 + $0x38] sm:$0xff] %v1324_v51  ;;  %v1338_v48 = vpop.permute.xlu1 %1337 }
0x19ed   :  { %1340 = vst.msk [vmem:[#allocation5] sm:$0xff] %vm44_vm0, %v1338_v48 }
0x19ee   :  { %1745 = shalt.err (!%p1742_p6)
}
0x19ef   :  { %s1746_s13 = scalar_lea.hbm %s2159_s2, 1024 }
0x19f0   :  { %p1747_p7 = scmp.ne.s32.totalorder %s2159_s2, %s1746_s13  ;;  %p1750_p8 = scmp.lt.u32.totalorder %s1746_s13, %s2159_s2 }
0x19f2   :  { %p1752_p9 = pnand %p1750_p8, %p1747_p7 }
0x19f4   :  { %1755 = shalt.err (!%p1752_p9)
}
0x19f5   :  { %1352 = dma.vmem_to_hbm [thread:$0]  %s1347_s9, 1024, %s2159_s2, [#allocation8], %s1763_s19, %s1763_s19, %s1764_s20  }
0x19f6   :  { %1760 = dma.done.wait [#allocation8], 1024  }
0x19f7   :  { %1761 = vsyncadd [#allocation8], 4294966272 }
0x19f8   :  { %1356 = vsyncpa [#allocation7], 1 }
0x19f9   :  { %1357 = vsyncpa [#allocation10], 1 }
0x19fa   :  { %1358 = vsyncpa [#allocation8], 1 }

</bundles_post_ra>
